<compile_context>
chip_gen: v7x
topology: tpu7x:2x2x1
jax: 0.10.0
libtpu: 0.0.40
codegen_flags: <defaults>
</compile_context>

<pallas_src>
import functools
import math

import jax
import jax.numpy as jnp
from jax.experimental import pallas as pl
from jax.experimental.pallas import tpu as pltpu

EMBED_SIZE = 384
NUM_HEADS = 6
HEAD_SIZE = EMBED_SIZE // NUM_HEADS  # 64
NEG_MASK = -1e30  # large finite negative: no NaN even if a row were fully masked


# ---------------------------------------------------------------------------
# Fused kernel: one (Bblk, T, C) batch block per grid step.
#   qkv projection -> per-(b, h) causal softmax attention -> scratch "concat"
#   -> output projection.
# ---------------------------------------------------------------------------
def _mha_fused_kernel(x_ref, wqkv_ref, bqkv_ref, wp_ref, bp_ref, o_ref,
                      attn_ref, *, compute_dtype):
    Bblk, T, C = x_ref.shape
    H, D = NUM_HEADS, HEAD_SIZE
    M = Bblk * T

    # Fold the batch block into the matmul row dimension (fills the MXU rows).
    x = x_ref[...].reshape(M, C).astype(compute_dtype)       # (M, C)
    wqkv = wqkv_ref[...]      # (C, 3C)  bf16/f32, VMEM-resident (constant index_map)
    bqkv = bqkv_ref[...]      # (1, 3C)
    wp = wp_ref[...]          # (C, C)
    bp = bp_ref[...]          # (1, C)

    # --- single lane-dense QKV projection: (M, C) @ (C, 3C), f32 accumulation.
    # NOTE: 1/sqrt(C) score scale is pre-folded into the q columns at pack time.
    qkv = jnp.dot(x, wqkv, preferred_element_type=jnp.float32) + bqkv   # (M, 3C) f32

    # Single full-width cast, hoisted out of the head loop.
    qkv_c = qkv.astype(compute_dtype)
    q_all = qkv_c[:, 0 * C:1 * C]
    k_all = qkv_c[:, 1 * C:2 * C]
    v_all = qkv_c[:, 2 * C:3 * C]

    row = jax.lax.broadcasted_iota(jnp.int32, (T, T), 0)
    col = jax.lax.broadcasted_iota(jnp.int32, (T, T), 1)
    causal = row >= col

    # Exact reciprocal on the f32-exact path; EUP approx on the bf16 fast path.
    approx = compute_dtype != jnp.float32

    # Per-(batch-row, head) attention, statically unrolled.  Head outputs land
    # directly in their column slot of a (M, C) f32 scratch: no 64-lane concat
    # relayout, and live ranges of head outputs are bounded.
    for b in range(Bblk):
        rs = slice(b * T, (b + 1) * T)
        for h in range(H):
            cs = slice(h * D, (h + 1) * D)
            qh = q_all[rs, cs]                                # (T, D)
            kh = k_all[rs, cs]
            vh = v_all[rs, cs]

            # q @ k^T without materializing k.T: contract the D axis directly.
            s = jax.lax.dot_general(
                qh, kh, (((1,), (1,)), ((), ())),
                preferred_element_type=jnp.float32,
            )                                                 # (T, T) f32
            s = jnp.where(causal, s, NEG_MASK)                # causal mask
            m = jnp.max(s, axis=-1, keepdims=True)
            e = jnp.exp(s - m)
            denom = jnp.sum(e, axis=-1, keepdims=True)
            probs = e * pl.reciprocal(denom, approx=approx)

            attn_ref[rs, cs] = jnp.dot(
                probs.astype(compute_dtype), vh,
                preferred_element_type=jnp.float32,
            )                                                 # (T, D) f32

    # Output projection on the full lane-dense (M, 384) slab (K=384 contraction).
    concat = attn_ref[...].astype(compute_dtype)
    out = jnp.dot(concat, wp, preferred_element_type=jnp.float32) + bp  # (M, C) f32
    o_ref[...] = out.reshape(Bblk, T, C).astype(o_ref.dtype)            # lane-dense store


def _choose_bblk(B, T, target_rows=256, max_rows=1024):
    """Largest useful batch fold: fill MXU rows but keep the grid as long as possible."""
    divisors = [d for d in range(1, B + 1) if B % d == 0]
    fitting = [d for d in divisors if d * T <= max_rows] or [1]
    for d in fitting:                       # smallest divisor that reaches the row target
        if d * T >= target_rows:            # -> maximal grid length (v7x megacore)
            return d
    return fitting[-1]                      # otherwise the largest block that fits VMEM


def multi_head_attention(x, params, *, compute_dtype=jnp.bfloat16):
    B, T, C = x.shape
    H, D = NUM_HEADS, HEAD_SIZE
    assert C == EMBED_SIZE

    # NOTE: the PyTorch module scales by C**0.5 with C = embed_size (not head_size).
    scale = 1.0 / math.sqrt(C)

    # ---- pack per-head weights once (host/XLA side), fold scale, cast to bf16 ----
    def pack_w(w):  # (H, C, D) -> (C, H*D), head h in columns [h*D, (h+1)*D)
        return jnp.transpose(w, (1, 0, 2)).reshape(C, H * D)

    def pack_b(b):
        return b.reshape(1, H * D)

    wqkv = jnp.concatenate(
        [pack_w(params["wq"]) * scale, pack_w(params["wk"]), pack_w(params["wv"])],
        axis=1,
    ).astype(compute_dtype)                                    # (C, 3C)
    bqkv = jnp.concatenate(
        [pack_b(params["bq"]) * scale, pack_b(params["bk"]), pack_b(params["bv"])],
        axis=1,
    ).astype(compute_dtype)                                    # (1, 3C)
    wp = params["wp"].astype(compute_dtype)                    # (C, C)
    bp = params["bp"].astype(compute_dtype)                    # (1, C)

    bblk = _choose_bblk(B, T)
    grid = (B // bblk,)

    kernel = functools.partial(_mha_fused_kernel, compute_dtype=compute_dtype)

    return pl.pallas_call(
        kernel,
        out_shape=jax.ShapeDtypeStruct((B, T, C), jnp.float32),
        grid_spec=pltpu.PrefetchScalarGridSpec(
            num_scalar_prefetch=0,
            grid=grid,
            in_specs=[
                pl.BlockSpec((bblk, T, C), lambda b: (b, 0, 0)),          # x block
                pl.BlockSpec((C, 3 * C), lambda b: (0, 0),
                             pipeline_mode=pl.Buffered(1)),               # wqkv resident
                pl.BlockSpec((1, 3 * C), lambda b: (0, 0),
                             pipeline_mode=pl.Buffered(1)),               # bqkv resident
                pl.BlockSpec((C, C), lambda b: (0, 0),
                             pipeline_mode=pl.Buffered(1)),               # wp resident
                pl.BlockSpec((1, C), lambda b: (0, 0),
                             pipeline_mode=pl.Buffered(1)),               # bp resident
            ],
            out_specs=pl.BlockSpec((bblk, T, C), lambda b: (b, 0, 0)),    # lane-dense out
            scratch_shapes=[pltpu.VMEM((bblk * T, C), jnp.float32)],      # head-output slab
        ),
        compiler_params=pltpu.CompilerParams(
            dimension_semantics=("parallel",),       # megacore over batch blocks (v7x)
            vmem_limit_bytes=32 * 1024 * 1024,       # explicit budget, safe on v5e/v6e/v7x
        ),
    )(x, wqkv, bqkv, wp, bp)


# ---------------------------------------------------------------------------
# Deterministic parameter init (synthetic; mirrors the nn.Linear shapes).
# ---------------------------------------------------------------------------
def init_params(key):
    ks = jax.random.split(key, 8)
    bound = 1.0 / math.sqrt(EMBED_SIZE)

    def u(k, shape):
        return jax.random.uniform(k, shape, jnp.float32, -bound, bound)

    return {
        "wq": u(ks[0], (NUM_HEADS, EMBED_SIZE, HEAD_SIZE)),
        "wk": u(ks[1], (NUM_HEADS, EMBED_SIZE, HEAD_SIZE)),
        "wv": u(ks[2], (NUM_HEADS, EMBED_SIZE, HEAD_SIZE)),
        "bq": u(ks[3], (NUM_HEADS, 1, HEAD_SIZE)),
        "bk": u(ks[4], (NUM_HEADS, 1, HEAD_SIZE)),
        "bv": u(ks[5], (NUM_HEADS, 1, HEAD_SIZE)),
        "wp": u(ks[6], (EMBED_SIZE, EMBED_SIZE)),
        "bp": u(ks[7], (1, EMBED_SIZE)),
    }


def reference(x, params):
    """Pure-JAX reference matching the PyTorch forward (eval mode)."""
    B, T, C = x.shape
    heads = []
    for h in range(NUM_HEADS):
        q = x @ params["wq"][h] + params["bq"][h]
        k = x @ params["wk"][h] + params["bk"][h]
        v = x @ params["wv"][h] + params["bv"][h]
        wei = q @ jnp.swapaxes(k, -1, -2) / math.sqrt(C)
        tril = jnp.tril(jnp.ones((T, T), jnp.float32))
        wei = jnp.where(tril == 0, -jnp.inf, wei)
        wei = jax.nn.softmax(wei, axis=-1)
        heads.append(wei @ v)
    out = jnp.concatenate(heads, axis=-1)
    return out @ params["wp"] + params["bp"]


if __name__ == "__main__":
    key = jax.random.PRNGKey(0)
    kx, kp = jax.random.split(key)

    B, T = 2, 8  # small seq (<= max_len=256); embed is fixed at 384 by the module
    x = jax.random.normal(kx, (B, T, EMBED_SIZE), jnp.float32)
    params = init_params(kp)

    ref = jax.block_until_ready(reference(x, params))

    # Production path: bf16 operands (host-cast weights), f32 accumulation.
    out = jax.block_until_ready(multi_head_attention(x, params))
    assert out.shape == (B, T, EMBED_SIZE)
    assert jnp.allclose(out, ref, atol=5e-2, rtol=5e-2), "bf16 path mismatch vs reference"

    # Module-exact f32 path (exact reciprocal on this path).
    out_f32 = jax.block_until_ready(
        multi_head_attention(x, params, compute_dtype=jnp.float32)
    )
    assert jnp.allclose(out_f32, ref, atol=2e-3, rtol=2e-3), "f32 path mismatch vs reference"

    print("KERNEL_OK")
</pallas_src>

<mosaic_0001>
module attributes {stable_mosaic.version = 11 : i64} {
  func.func @_mha_fused_kernel(%arg0: i32, %arg1: memref<2x8x384xf32, #tpu.memory_space<vmem>>, %arg2: memref<384x1152xbf16, #tpu.memory_space<vmem>>, %arg3: memref<1x1152xbf16, #tpu.memory_space<vmem>>, %arg4: memref<384x384xbf16, #tpu.memory_space<vmem>>, %arg5: memref<1x384xbf16, #tpu.memory_space<vmem>>, %arg6: memref<2x8x384xf32, #tpu.memory_space<vmem>>, %arg7: memref<16x384xf32, #tpu.memory_space<vmem>>) attributes {dimension_semantics = [#tpu.dimension_semantics<parallel>], iteration_bounds = array<i64: 1>, scalar_prefetch = 0 : i64, scratch_operands = 1 : i64, tpu.core_type = #tpu.core_type<tc>, window_params = [{transform_indices = @transform_0, window_bounds = array<i64: 2, 8, 384>}, {pipeline_mode = #tpu.pipeline_mode<synchronous>, transform_indices = @transform_1, window_bounds = array<i64: 384, 1152>}, {pipeline_mode = #tpu.pipeline_mode<synchronous>, transform_indices = @transform_2, window_bounds = array<i64: 1, 1152>}, {pipeline_mode = #tpu.pipeline_mode<synchronous>, transform_indices = @transform_3, window_bounds = array<i64: 384, 384>}, {pipeline_mode = #tpu.pipeline_mode<synchronous>, transform_indices = @transform_4, window_bounds = array<i64: 1, 384>}, {transform_indices = @transform_5, window_bounds = array<i64: 2, 8, 384>}]} {
    %c0 = arith.constant 0 : index
    %c0_0 = arith.constant 0 : index
    %c0_1 = arith.constant 0 : index
    %0 = vector.load %arg1[%c0, %c0_0, %c0_1] : memref<2x8x384xf32, #tpu.memory_space<vmem>>, vector<2x8x384xf32>
    %1 = vector.shape_cast %0 : vector<2x8x384xf32> to vector<16x384xf32>
    %2 = arith.truncf %1 : vector<16x384xf32> to vector<16x384xbf16>
    %c0_2 = arith.constant 0 : index
    %c0_3 = arith.constant 0 : index
    %3 = vector.load %arg2[%c0_2, %c0_3] : memref<384x1152xbf16, #tpu.memory_space<vmem>>, vector<384x1152xbf16>
    %c0_4 = arith.constant 0 : index
    %c0_5 = arith.constant 0 : index
    %4 = vector.load %arg3[%c0_4, %c0_5] : memref<1x1152xbf16, #tpu.memory_space<vmem>>, vector<1x1152xbf16>
    %c0_6 = arith.constant 0 : index
    %c0_7 = arith.constant 0 : index
    %5 = vector.load %arg4[%c0_6, %c0_7] : memref<384x384xbf16, #tpu.memory_space<vmem>>, vector<384x384xbf16>
    %c0_8 = arith.constant 0 : index
    %c0_9 = arith.constant 0 : index
    %6 = vector.load %arg5[%c0_8, %c0_9] : memref<1x384xbf16, #tpu.memory_space<vmem>>, vector<1x384xbf16>
    %cst = arith.constant dense<0.000000e+00> : vector<16x1152xf32>
    %7 = tpu.matmul %2, %3, %cst {dimension_numbers = #tpu.dot_dimension_numbers<[1], [0], [0], [1], [0, 0, 1, 1], [], []>} : vector<16x384xbf16>, vector<384x1152xbf16>, vector<16x1152xf32> -> vector<16x1152xf32>
    %8 = arith.extf %4 : vector<1x1152xbf16> to vector<1x1152xf32>
    %9 = vector.broadcast %8 : vector<1x1152xf32> to vector<16x1152xf32>
    %10 = arith.addf %7, %9 : vector<16x1152xf32>
    %11 = arith.truncf %10 : vector<16x1152xf32> to vector<16x1152xbf16>
    %12 = vector.extract_strided_slice %11 {offsets = [0, 0], sizes = [16, 384], strides = [1, 1]} : vector<16x1152xbf16> to vector<16x384xbf16>
    %13 = vector.extract_strided_slice %11 {offsets = [0, 384], sizes = [16, 384], strides = [1, 1]} : vector<16x1152xbf16> to vector<16x384xbf16>
    %14 = vector.extract_strided_slice %11 {offsets = [0, 768], sizes = [16, 384], strides = [1, 1]} : vector<16x1152xbf16> to vector<16x384xbf16>
    %15 = tpu.iota {dimensions = array<i32: 0>} : vector<8x8xi32>
    %16 = tpu.iota {dimensions = array<i32: 1>} : vector<8x8xi32>
    %17 = arith.cmpi sge, %15, %16 : vector<8x8xi32>
    %18 = vector.extract_strided_slice %12 {offsets = [0, 0], sizes = [8, 64], strides = [1, 1]} : vector<16x384xbf16> to vector<8x64xbf16>
    %19 = vector.extract_strided_slice %13 {offsets = [0, 0], sizes = [8, 64], strides = [1, 1]} : vector<16x384xbf16> to vector<8x64xbf16>
    %20 = vector.extract_strided_slice %14 {offsets = [0, 0], sizes = [8, 64], strides = [1, 1]} : vector<16x384xbf16> to vector<8x64xbf16>
    %cst_10 = arith.constant dense<0.000000e+00> : vector<8x8xf32>
    %21 = tpu.matmul %18, %19, %cst_10 {dimension_numbers = #tpu.dot_dimension_numbers<[1], [1], [0], [0], [0, 0, 1, 0], [], []>} : vector<8x64xbf16>, vector<8x64xbf16>, vector<8x8xf32> -> vector<8x8xf32>
    %cst_11 = arith.constant -1.000000e+30 : f32
    %22 = vector.broadcast %cst_11 : f32 to vector<8x8xf32>
    %23 = arith.select %17, %21, %22 : vector<8x8xi1>, vector<8x8xf32>
    %cst_12 = arith.constant dense<0xFF800000> : vector<8xf32>
    %24 = vector.multi_reduction <maximumf>, %23, %cst_12 [1] : vector<8x8xf32> to vector<8xf32>
    %25 = vector.shape_cast %24 : vector<8xf32> to vector<8x1xf32>
    %26 = vector.broadcast %25 : vector<8x1xf32> to vector<8x8xf32>
    %27 = arith.subf %23, %26 : vector<8x8xf32>
    %28 = math.exp %27 : vector<8x8xf32>
    %cst_13 = arith.constant dense<0.000000e+00> : vector<8xf32>
    %29 = vector.multi_reduction <add>, %28, %cst_13 [1] : vector<8x8xf32> to vector<8xf32>
    %30 = vector.shape_cast %29 : vector<8xf32> to vector<8x1xf32>
    %31 = tpu.reciprocal %30 {approx = true} : vector<8x1xf32> -> vector<8x1xf32>
    %32 = vector.broadcast %31 : vector<8x1xf32> to vector<8x8xf32>
    %33 = arith.mulf %28, %32 : vector<8x8xf32>
    %34 = arith.truncf %33 : vector<8x8xf32> to vector<8x8xbf16>
    %cst_14 = arith.constant dense<0.000000e+00> : vector<8x64xf32>
    %35 = tpu.matmul %34, %20, %cst_14 {dimension_numbers = #tpu.dot_dimension_numbers<[1], [0], [0], [1], [0, 0, 1, 1], [], []>} : vector<8x8xbf16>, vector<8x64xbf16>, vector<8x64xf32> -> vector<8x64xf32>
    %c0_15 = arith.constant 0 : index
    %c0_16 = arith.constant 0 : index
    %36 = vector.load %arg7[%c0_15, %c0_16] : memref<16x384xf32, #tpu.memory_space<vmem>>, vector<8x64xf32>
    tpu.vector_store %arg7[%c0_15, %c0_16], %35 {strides = array<i32>} : memref<16x384xf32, #tpu.memory_space<vmem>>, vector<8x64xf32>,
    %37 = vector.extract_strided_slice %12 {offsets = [0, 64], sizes = [8, 64], strides = [1, 1]} : vector<16x384xbf16> to vector<8x64xbf16>
    %38 = vector.extract_strided_slice %13 {offsets = [0, 64], sizes = [8, 64], strides = [1, 1]} : vector<16x384xbf16> to vector<8x64xbf16>
    %39 = vector.extract_strided_slice %14 {offsets = [0, 64], sizes = [8, 64], strides = [1, 1]} : vector<16x384xbf16> to vector<8x64xbf16>
    %cst_17 = arith.constant dense<0.000000e+00> : vector<8x8xf32>
    %40 = tpu.matmul %37, %38, %cst_17 {dimension_numbers = #tpu.dot_dimension_numbers<[1], [1], [0], [0], [0, 0, 1, 0], [], []>} : vector<8x64xbf16>, vector<8x64xbf16>, vector<8x8xf32> -> vector<8x8xf32>
    %cst_18 = arith.constant -1.000000e+30 : f32
    %41 = vector.broadcast %cst_18 : f32 to vector<8x8xf32>
    %42 = arith.select %17, %40, %41 : vector<8x8xi1>, vector<8x8xf32>
    %cst_19 = arith.constant dense<0xFF800000> : vector<8xf32>
    %43 = vector.multi_reduction <maximumf>, %42, %cst_19 [1] : vector<8x8xf32> to vector<8xf32>
    %44 = vector.shape_cast %43 : vector<8xf32> to vector<8x1xf32>
    %45 = vector.broadcast %44 : vector<8x1xf32> to vector<8x8xf32>
    %46 = arith.subf %42, %45 : vector<8x8xf32>
    %47 = math.exp %46 : vector<8x8xf32>
    %cst_20 = arith.constant dense<0.000000e+00> : vector<8xf32>
    %48 = vector.multi_reduction <add>, %47, %cst_20 [1] : vector<8x8xf32> to vector<8xf32>
    %49 = vector.shape_cast %48 : vector<8xf32> to vector<8x1xf32>
    %50 = tpu.reciprocal %49 {approx = true} : vector<8x1xf32> -> vector<8x1xf32>
    %51 = vector.broadcast %50 : vector<8x1xf32> to vector<8x8xf32>
    %52 = arith.mulf %47, %51 : vector<8x8xf32>
    %53 = arith.truncf %52 : vector<8x8xf32> to vector<8x8xbf16>
    %cst_21 = arith.constant dense<0.000000e+00> : vector<8x64xf32>
    %54 = tpu.matmul %53, %39, %cst_21 {dimension_numbers = #tpu.dot_dimension_numbers<[1], [0], [0], [1], [0, 0, 1, 1], [], []>} : vector<8x8xbf16>, vector<8x64xbf16>, vector<8x64xf32> -> vector<8x64xf32>
    %c0_22 = arith.constant 0 : index
    %c64 = arith.constant 64 : index
    %55 = vector.load %arg7[%c0_22, %c64] : memref<16x384xf32, #tpu.memory_space<vmem>>, vector<8x64xf32>
    tpu.vector_store %arg7[%c0_22, %c64], %54 {strides = array<i32>} : memref<16x384xf32, #tpu.memory_space<vmem>>, vector<8x64xf32>,
    %56 = vector.extract_strided_slice %12 {offsets = [0, 128], sizes = [8, 64], strides = [1, 1]} : vector<16x384xbf16> to vector<8x64xbf16>
    %57 = vector.extract_strided_slice %13 {offsets = [0, 128], sizes = [8, 64], strides = [1, 1]} : vector<16x384xbf16> to vector<8x64xbf16>
    %58 = vector.extract_strided_slice %14 {offsets = [0, 128], sizes = [8, 64], strides = [1, 1]} : vector<16x384xbf16> to vector<8x64xbf16>
    %cst_23 = arith.constant dense<0.000000e+00> : vector<8x8xf32>
    %59 = tpu.matmul %56, %57, %cst_23 {dimension_numbers = #tpu.dot_dimension_numbers<[1], [1], [0], [0], [0, 0, 1, 0], [], []>} : vector<8x64xbf16>, vector<8x64xbf16>, vector<8x8xf32> -> vector<8x8xf32>
    %cst_24 = arith.constant -1.000000e+30 : f32
    %60 = vector.broadcast %cst_24 : f32 to vector<8x8xf32>
    %61 = arith.select %17, %59, %60 : vector<8x8xi1>, vector<8x8xf32>
    %cst_25 = arith.constant dense<0xFF800000> : vector<8xf32>
    %62 = vector.multi_reduction <maximumf>, %61, %cst_25 [1] : vector<8x8xf32> to vector<8xf32>
    %63 = vector.shape_cast %62 : vector<8xf32> to vector<8x1xf32>
    %64 = vector.broadcast %63 : vector<8x1xf32> to vector<8x8xf32>
    %65 = arith.subf %61, %64 : vector<8x8xf32>
    %66 = math.exp %65 : vector<8x8xf32>
    %cst_26 = arith.constant dense<0.000000e+00> : vector<8xf32>
    %67 = vector.multi_reduction <add>, %66, %cst_26 [1] : vector<8x8xf32> to vector<8xf32>
    %68 = vector.shape_cast %67 : vector<8xf32> to vector<8x1xf32>
    %69 = tpu.reciprocal %68 {approx = true} : vector<8x1xf32> -> vector<8x1xf32>
    %70 = vector.broadcast %69 : vector<8x1xf32> to vector<8x8xf32>
    %71 = arith.mulf %66, %70 : vector<8x8xf32>
    %72 = arith.truncf %71 : vector<8x8xf32> to vector<8x8xbf16>
    %cst_27 = arith.constant dense<0.000000e+00> : vector<8x64xf32>
    %73 = tpu.matmul %72, %58, %cst_27 {dimension_numbers = #tpu.dot_dimension_numbers<[1], [0], [0], [1], [0, 0, 1, 1], [], []>} : vector<8x8xbf16>, vector<8x64xbf16>, vector<8x64xf32> -> vector<8x64xf32>
    %c0_28 = arith.constant 0 : index
    %c128 = arith.constant 128 : index
    %74 = vector.load %arg7[%c0_28, %c128] : memref<16x384xf32, #tpu.memory_space<vmem>>, vector<8x64xf32>
    tpu.vector_store %arg7[%c0_28, %c128], %73 {strides = array<i32>} : memref<16x384xf32, #tpu.memory_space<vmem>>, vector<8x64xf32>,
    %75 = vector.extract_strided_slice %12 {offsets = [0, 192], sizes = [8, 64], strides = [1, 1]} : vector<16x384xbf16> to vector<8x64xbf16>
    %76 = vector.extract_strided_slice %13 {offsets = [0, 192], sizes = [8, 64], strides = [1, 1]} : vector<16x384xbf16> to vector<8x64xbf16>
    %77 = vector.extract_strided_slice %14 {offsets = [0, 192], sizes = [8, 64], strides = [1, 1]} : vector<16x384xbf16> to vector<8x64xbf16>
    %cst_29 = arith.constant dense<0.000000e+00> : vector<8x8xf32>
    %78 = tpu.matmul %75, %76, %cst_29 {dimension_numbers = #tpu.dot_dimension_numbers<[1], [1], [0], [0], [0, 0, 1, 0], [], []>} : vector<8x64xbf16>, vector<8x64xbf16>, vector<8x8xf32> -> vector<8x8xf32>
    %cst_30 = arith.constant -1.000000e+30 : f32
    %79 = vector.broadcast %cst_30 : f32 to vector<8x8xf32>
    %80 = arith.select %17, %78, %79 : vector<8x8xi1>, vector<8x8xf32>
    %cst_31 = arith.constant dense<0xFF800000> : vector<8xf32>
    %81 = vector.multi_reduction <maximumf>, %80, %cst_31 [1] : vector<8x8xf32> to vector<8xf32>
    %82 = vector.shape_cast %81 : vector<8xf32> to vector<8x1xf32>
    %83 = vector.broadcast %82 : vector<8x1xf32> to vector<8x8xf32>
    %84 = arith.subf %80, %83 : vector<8x8xf32>
    %85 = math.exp %84 : vector<8x8xf32>
    %cst_32 = arith.constant dense<0.000000e+00> : vector<8xf32>
    %86 = vector.multi_reduction <add>, %85, %cst_32 [1] : vector<8x8xf32> to vector<8xf32>
    %87 = vector.shape_cast %86 : vector<8xf32> to vector<8x1xf32>
    %88 = tpu.reciprocal %87 {approx = true} : vector<8x1xf32> -> vector<8x1xf32>
    %89 = vector.broadcast %88 : vector<8x1xf32> to vector<8x8xf32>
    %90 = arith.mulf %85, %89 : vector<8x8xf32>
    %91 = arith.truncf %90 : vector<8x8xf32> to vector<8x8xbf16>
    %cst_33 = arith.constant dense<0.000000e+00> : vector<8x64xf32>
    %92 = tpu.matmul %91, %77, %cst_33 {dimension_numbers = #tpu.dot_dimension_numbers<[1], [0], [0], [1], [0, 0, 1, 1], [], []>} : vector<8x8xbf16>, vector<8x64xbf16>, vector<8x64xf32> -> vector<8x64xf32>
    %c0_34 = arith.constant 0 : index
    %c192 = arith.constant 192 : index
    %93 = vector.load %arg7[%c0_34, %c192] : memref<16x384xf32, #tpu.memory_space<vmem>>, vector<8x64xf32>
    tpu.vector_store %arg7[%c0_34, %c192], %92 {strides = array<i32>} : memref<16x384xf32, #tpu.memory_space<vmem>>, vector<8x64xf32>,
    %94 = vector.extract_strided_slice %12 {offsets = [0, 256], sizes = [8, 64], strides = [1, 1]} : vector<16x384xbf16> to vector<8x64xbf16>
    %95 = vector.extract_strided_slice %13 {offsets = [0, 256], sizes = [8, 64], strides = [1, 1]} : vector<16x384xbf16> to vector<8x64xbf16>
    %96 = vector.extract_strided_slice %14 {offsets = [0, 256], sizes = [8, 64], strides = [1, 1]} : vector<16x384xbf16> to vector<8x64xbf16>
    %cst_35 = arith.constant dense<0.000000e+00> : vector<8x8xf32>
    %97 = tpu.matmul %94, %95, %cst_35 {dimension_numbers = #tpu.dot_dimension_numbers<[1], [1], [0], [0], [0, 0, 1, 0], [], []>} : vector<8x64xbf16>, vector<8x64xbf16>, vector<8x8xf32> -> vector<8x8xf32>
    %cst_36 = arith.constant -1.000000e+30 : f32
    %98 = vector.broadcast %cst_36 : f32 to vector<8x8xf32>
    %99 = arith.select %17, %97, %98 : vector<8x8xi1>, vector<8x8xf32>
    %cst_37 = arith.constant dense<0xFF800000> : vector<8xf32>
    %100 = vector.multi_reduction <maximumf>, %99, %cst_37 [1] : vector<8x8xf32> to vector<8xf32>
    %101 = vector.shape_cast %100 : vector<8xf32> to vector<8x1xf32>
    %102 = vector.broadcast %101 : vector<8x1xf32> to vector<8x8xf32>
    %103 = arith.subf %99, %102 : vector<8x8xf32>
    %104 = math.exp %103 : vector<8x8xf32>
    %cst_38 = arith.constant dense<0.000000e+00> : vector<8xf32>
    %105 = vector.multi_reduction <add>, %104, %cst_38 [1] : vector<8x8xf32> to vector<8xf32>
    %106 = vector.shape_cast %105 : vector<8xf32> to vector<8x1xf32>
    %107 = tpu.reciprocal %106 {approx = true} : vector<8x1xf32> -> vector<8x1xf32>
    %108 = vector.broadcast %107 : vector<8x1xf32> to vector<8x8xf32>
    %109 = arith.mulf %104, %108 : vector<8x8xf32>
    %110 = arith.truncf %109 : vector<8x8xf32> to vector<8x8xbf16>
    %cst_39 = arith.constant dense<0.000000e+00> : vector<8x64xf32>
    %111 = tpu.matmul %110, %96, %cst_39 {dimension_numbers = #tpu.dot_dimension_numbers<[1], [0], [0], [1], [0, 0, 1, 1], [], []>} : vector<8x8xbf16>, vector<8x64xbf16>, vector<8x64xf32> -> vector<8x64xf32>
    %c0_40 = arith.constant 0 : index
    %c256 = arith.constant 256 : index
    %112 = vector.load %arg7[%c0_40, %c256] : memref<16x384xf32, #tpu.memory_space<vmem>>, vector<8x64xf32>
    tpu.vector_store %arg7[%c0_40, %c256], %111 {strides = array<i32>} : memref<16x384xf32, #tpu.memory_space<vmem>>, vector<8x64xf32>,
    %113 = vector.extract_strided_slice %12 {offsets = [0, 320], sizes = [8, 64], strides = [1, 1]} : vector<16x384xbf16> to vector<8x64xbf16>
    %114 = vector.extract_strided_slice %13 {offsets = [0, 320], sizes = [8, 64], strides = [1, 1]} : vector<16x384xbf16> to vector<8x64xbf16>
    %115 = vector.extract_strided_slice %14 {offsets = [0, 320], sizes = [8, 64], strides = [1, 1]} : vector<16x384xbf16> to vector<8x64xbf16>
    %cst_41 = arith.constant dense<0.000000e+00> : vector<8x8xf32>
    %116 = tpu.matmul %113, %114, %cst_41 {dimension_numbers = #tpu.dot_dimension_numbers<[1], [1], [0], [0], [0, 0, 1, 0], [], []>} : vector<8x64xbf16>, vector<8x64xbf16>, vector<8x8xf32> -> vector<8x8xf32>
    %cst_42 = arith.constant -1.000000e+30 : f32
    %117 = vector.broadcast %cst_42 : f32 to vector<8x8xf32>
    %118 = arith.select %17, %116, %117 : vector<8x8xi1>, vector<8x8xf32>
    %cst_43 = arith.constant dense<0xFF800000> : vector<8xf32>
    %119 = vector.multi_reduction <maximumf>, %118, %cst_43 [1] : vector<8x8xf32> to vector<8xf32>
    %120 = vector.shape_cast %119 : vector<8xf32> to vector<8x1xf32>
    %121 = vector.broadcast %120 : vector<8x1xf32> to vector<8x8xf32>
    %122 = arith.subf %118, %121 : vector<8x8xf32>
    %123 = math.exp %122 : vector<8x8xf32>
    %cst_44 = arith.constant dense<0.000000e+00> : vector<8xf32>
    %124 = vector.multi_reduction <add>, %123, %cst_44 [1] : vector<8x8xf32> to vector<8xf32>
    %125 = vector.shape_cast %124 : vector<8xf32> to vector<8x1xf32>
    %126 = tpu.reciprocal %125 {approx = true} : vector<8x1xf32> -> vector<8x1xf32>
    %127 = vector.broadcast %126 : vector<8x1xf32> to vector<8x8xf32>
    %128 = arith.mulf %123, %127 : vector<8x8xf32>
    %129 = arith.truncf %128 : vector<8x8xf32> to vector<8x8xbf16>
    %cst_45 = arith.constant dense<0.000000e+00> : vector<8x64xf32>
    %130 = tpu.matmul %129, %115, %cst_45 {dimension_numbers = #tpu.dot_dimension_numbers<[1], [0], [0], [1], [0, 0, 1, 1], [], []>} : vector<8x8xbf16>, vector<8x64xbf16>, vector<8x64xf32> -> vector<8x64xf32>
    %c0_46 = arith.constant 0 : index
    %c320 = arith.constant 320 : index
    %131 = vector.load %arg7[%c0_46, %c320] : memref<16x384xf32, #tpu.memory_space<vmem>>, vector<8x64xf32>
    tpu.vector_store %arg7[%c0_46, %c320], %130 {strides = array<i32>} : memref<16x384xf32, #tpu.memory_space<vmem>>, vector<8x64xf32>,
    %132 = vector.extract_strided_slice %12 {offsets = [8, 0], sizes = [8, 64], strides = [1, 1]} : vector<16x384xbf16> to vector<8x64xbf16>
    %133 = vector.extract_strided_slice %13 {offsets = [8, 0], sizes = [8, 64], strides = [1, 1]} : vector<16x384xbf16> to vector<8x64xbf16>
    %134 = vector.extract_strided_slice %14 {offsets = [8, 0], sizes = [8, 64], strides = [1, 1]} : vector<16x384xbf16> to vector<8x64xbf16>
    %cst_47 = arith.constant dense<0.000000e+00> : vector<8x8xf32>
    %135 = tpu.matmul %132, %133, %cst_47 {dimension_numbers = #tpu.dot_dimension_numbers<[1], [1], [0], [0], [0, 0, 1, 0], [], []>} : vector<8x64xbf16>, vector<8x64xbf16>, vector<8x8xf32> -> vector<8x8xf32>
    %cst_48 = arith.constant -1.000000e+30 : f32
    %136 = vector.broadcast %cst_48 : f32 to vector<8x8xf32>
    %137 = arith.select %17, %135, %136 : vector<8x8xi1>, vector<8x8xf32>
    %cst_49 = arith.constant dense<0xFF800000> : vector<8xf32>
    %138 = vector.multi_reduction <maximumf>, %137, %cst_49 [1] : vector<8x8xf32> to vector<8xf32>
    %139 = vector.shape_cast %138 : vector<8xf32> to vector<8x1xf32>
    %140 = vector.broadcast %139 : vector<8x1xf32> to vector<8x8xf32>
    %141 = arith.subf %137, %140 : vector<8x8xf32>
    %142 = math.exp %141 : vector<8x8xf32>
    %cst_50 = arith.constant dense<0.000000e+00> : vector<8xf32>
    %143 = vector.multi_reduction <add>, %142, %cst_50 [1] : vector<8x8xf32> to vector<8xf32>
    %144 = vector.shape_cast %143 : vector<8xf32> to vector<8x1xf32>
    %145 = tpu.reciprocal %144 {approx = true} : vector<8x1xf32> -> vector<8x1xf32>
    %146 = vector.broadcast %145 : vector<8x1xf32> to vector<8x8xf32>
    %147 = arith.mulf %142, %146 : vector<8x8xf32>
    %148 = arith.truncf %147 : vector<8x8xf32> to vector<8x8xbf16>
    %cst_51 = arith.constant dense<0.000000e+00> : vector<8x64xf32>
    %149 = tpu.matmul %148, %134, %cst_51 {dimension_numbers = #tpu.dot_dimension_numbers<[1], [0], [0], [1], [0, 0, 1, 1], [], []>} : vector<8x8xbf16>, vector<8x64xbf16>, vector<8x64xf32> -> vector<8x64xf32>
    %c8 = arith.constant 8 : index
    %c0_52 = arith.constant 0 : index
    %150 = vector.load %arg7[%c8, %c0_52] : memref<16x384xf32, #tpu.memory_space<vmem>>, vector<8x64xf32>
    tpu.vector_store %arg7[%c8, %c0_52], %149 {strides = array<i32>} : memref<16x384xf32, #tpu.memory_space<vmem>>, vector<8x64xf32>,
    %151 = vector.extract_strided_slice %12 {offsets = [8, 64], sizes = [8, 64], strides = [1, 1]} : vector<16x384xbf16> to vector<8x64xbf16>
    %152 = vector.extract_strided_slice %13 {offsets = [8, 64], sizes = [8, 64], strides = [1, 1]} : vector<16x384xbf16> to vector<8x64xbf16>
    %153 = vector.extract_strided_slice %14 {offsets = [8, 64], sizes = [8, 64], strides = [1, 1]} : vector<16x384xbf16> to vector<8x64xbf16>
    %cst_53 = arith.constant dense<0.000000e+00> : vector<8x8xf32>
    %154 = tpu.matmul %151, %152, %cst_53 {dimension_numbers = #tpu.dot_dimension_numbers<[1], [1], [0], [0], [0, 0, 1, 0], [], []>} : vector<8x64xbf16>, vector<8x64xbf16>, vector<8x8xf32> -> vector<8x8xf32>
    %cst_54 = arith.constant -1.000000e+30 : f32
    %155 = vector.broadcast %cst_54 : f32 to vector<8x8xf32>
    %156 = arith.select %17, %154, %155 : vector<8x8xi1>, vector<8x8xf32>
    %cst_55 = arith.constant dense<0xFF800000> : vector<8xf32>
    %157 = vector.multi_reduction <maximumf>, %156, %cst_55 [1] : vector<8x8xf32> to vector<8xf32>
    %158 = vector.shape_cast %157 : vector<8xf32> to vector<8x1xf32>
    %159 = vector.broadcast %158 : vector<8x1xf32> to vector<8x8xf32>
    %160 = arith.subf %156, %159 : vector<8x8xf32>
    %161 = math.exp %160 : vector<8x8xf32>
    %cst_56 = arith.constant dense<0.000000e+00> : vector<8xf32>
    %162 = vector.multi_reduction <add>, %161, %cst_56 [1] : vector<8x8xf32> to vector<8xf32>
    %163 = vector.shape_cast %162 : vector<8xf32> to vector<8x1xf32>
    %164 = tpu.reciprocal %163 {approx = true} : vector<8x1xf32> -> vector<8x1xf32>
    %165 = vector.broadcast %164 : vector<8x1xf32> to vector<8x8xf32>
    %166 = arith.mulf %161, %165 : vector<8x8xf32>
    %167 = arith.truncf %166 : vector<8x8xf32> to vector<8x8xbf16>
    %cst_57 = arith.constant dense<0.000000e+00> : vector<8x64xf32>
    %168 = tpu.matmul %167, %153, %cst_57 {dimension_numbers = #tpu.dot_dimension_numbers<[1], [0], [0], [1], [0, 0, 1, 1], [], []>} : vector<8x8xbf16>, vector<8x64xbf16>, vector<8x64xf32> -> vector<8x64xf32>
    %c8_58 = arith.constant 8 : index
    %c64_59 = arith.constant 64 : index
    %169 = vector.load %arg7[%c8_58, %c64_59] : memref<16x384xf32, #tpu.memory_space<vmem>>, vector<8x64xf32>
    tpu.vector_store %arg7[%c8_58, %c64_59], %168 {strides = array<i32>} : memref<16x384xf32, #tpu.memory_space<vmem>>, vector<8x64xf32>,
    %170 = vector.extract_strided_slice %12 {offsets = [8, 128], sizes = [8, 64], strides = [1, 1]} : vector<16x384xbf16> to vector<8x64xbf16>
    %171 = vector.extract_strided_slice %13 {offsets = [8, 128], sizes = [8, 64], strides = [1, 1]} : vector<16x384xbf16> to vector<8x64xbf16>
    %172 = vector.extract_strided_slice %14 {offsets = [8, 128], sizes = [8, 64], strides = [1, 1]} : vector<16x384xbf16> to vector<8x64xbf16>
    %cst_60 = arith.constant dense<0.000000e+00> : vector<8x8xf32>
    %173 = tpu.matmul %170, %171, %cst_60 {dimension_numbers = #tpu.dot_dimension_numbers<[1], [1], [0], [0], [0, 0, 1, 0], [], []>} : vector<8x64xbf16>, vector<8x64xbf16>, vector<8x8xf32> -> vector<8x8xf32>
    %cst_61 = arith.constant -1.000000e+30 : f32
    %174 = vector.broadcast %cst_61 : f32 to vector<8x8xf32>
    %175 = arith.select %17, %173, %174 : vector<8x8xi1>, vector<8x8xf32>
    %cst_62 = arith.constant dense<0xFF800000> : vector<8xf32>
    %176 = vector.multi_reduction <maximumf>, %175, %cst_62 [1] : vector<8x8xf32> to vector<8xf32>
    %177 = vector.shape_cast %176 : vector<8xf32> to vector<8x1xf32>
    %178 = vector.broadcast %177 : vector<8x1xf32> to vector<8x8xf32>
    %179 = arith.subf %175, %178 : vector<8x8xf32>
    %180 = math.exp %179 : vector<8x8xf32>
    %cst_63 = arith.constant dense<0.000000e+00> : vector<8xf32>
    %181 = vector.multi_reduction <add>, %180, %cst_63 [1] : vector<8x8xf32> to vector<8xf32>
    %182 = vector.shape_cast %181 : vector<8xf32> to vector<8x1xf32>
    %183 = tpu.reciprocal %182 {approx = true} : vector<8x1xf32> -> vector<8x1xf32>
    %184 = vector.broadcast %183 : vector<8x1xf32> to vector<8x8xf32>
    %185 = arith.mulf %180, %184 : vector<8x8xf32>
    %186 = arith.truncf %185 : vector<8x8xf32> to vector<8x8xbf16>
    %cst_64 = arith.constant dense<0.000000e+00> : vector<8x64xf32>
    %187 = tpu.matmul %186, %172, %cst_64 {dimension_numbers = #tpu.dot_dimension_numbers<[1], [0], [0], [1], [0, 0, 1, 1], [], []>} : vector<8x8xbf16>, vector<8x64xbf16>, vector<8x64xf32> -> vector<8x64xf32>
    %c8_65 = arith.constant 8 : index
    %c128_66 = arith.constant 128 : index
    %188 = vector.load %arg7[%c8_65, %c128_66] : memref<16x384xf32, #tpu.memory_space<vmem>>, vector<8x64xf32>
    tpu.vector_store %arg7[%c8_65, %c128_66], %187 {strides = array<i32>} : memref<16x384xf32, #tpu.memory_space<vmem>>, vector<8x64xf32>,
    %189 = vector.extract_strided_slice %12 {offsets = [8, 192], sizes = [8, 64], strides = [1, 1]} : vector<16x384xbf16> to vector<8x64xbf16>
    %190 = vector.extract_strided_slice %13 {offsets = [8, 192], sizes = [8, 64], strides = [1, 1]} : vector<16x384xbf16> to vector<8x64xbf16>
    %191 = vector.extract_strided_slice %14 {offsets = [8, 192], sizes = [8, 64], strides = [1, 1]} : vector<16x384xbf16> to vector<8x64xbf16>
    %cst_67 = arith.constant dense<0.000000e+00> : vector<8x8xf32>
    %192 = tpu.matmul %189, %190, %cst_67 {dimension_numbers = #tpu.dot_dimension_numbers<[1], [1], [0], [0], [0, 0, 1, 0], [], []>} : vector<8x64xbf16>, vector<8x64xbf16>, vector<8x8xf32> -> vector<8x8xf32>
    %cst_68 = arith.constant -1.000000e+30 : f32
    %193 = vector.broadcast %cst_68 : f32 to vector<8x8xf32>
    %194 = arith.select %17, %192, %193 : vector<8x8xi1>, vector<8x8xf32>
    %cst_69 = arith.constant dense<0xFF800000> : vector<8xf32>
    %195 = vector.multi_reduction <maximumf>, %194, %cst_69 [1] : vector<8x8xf32> to vector<8xf32>
    %196 = vector.shape_cast %195 : vector<8xf32> to vector<8x1xf32>
    %197 = vector.broadcast %196 : vector<8x1xf32> to vector<8x8xf32>
    %198 = arith.subf %194, %197 : vector<8x8xf32>
    %199 = math.exp %198 : vector<8x8xf32>
    %cst_70 = arith.constant dense<0.000000e+00> : vector<8xf32>
    %200 = vector.multi_reduction <add>, %199, %cst_70 [1] : vector<8x8xf32> to vector<8xf32>
    %201 = vector.shape_cast %200 : vector<8xf32> to vector<8x1xf32>
    %202 = tpu.reciprocal %201 {approx = true} : vector<8x1xf32> -> vector<8x1xf32>
    %203 = vector.broadcast %202 : vector<8x1xf32> to vector<8x8xf32>
    %204 = arith.mulf %199, %203 : vector<8x8xf32>
    %205 = arith.truncf %204 : vector<8x8xf32> to vector<8x8xbf16>
    %cst_71 = arith.constant dense<0.000000e+00> : vector<8x64xf32>
    %206 = tpu.matmul %205, %191, %cst_71 {dimension_numbers = #tpu.dot_dimension_numbers<[1], [0], [0], [1], [0, 0, 1, 1], [], []>} : vector<8x8xbf16>, vector<8x64xbf16>, vector<8x64xf32> -> vector<8x64xf32>
    %c8_72 = arith.constant 8 : index
    %c192_73 = arith.constant 192 : index
    %207 = vector.load %arg7[%c8_72, %c192_73] : memref<16x384xf32, #tpu.memory_space<vmem>>, vector<8x64xf32>
    tpu.vector_store %arg7[%c8_72, %c192_73], %206 {strides = array<i32>} : memref<16x384xf32, #tpu.memory_space<vmem>>, vector<8x64xf32>,
    %208 = vector.extract_strided_slice %12 {offsets = [8, 256], sizes = [8, 64], strides = [1, 1]} : vector<16x384xbf16> to vector<8x64xbf16>
    %209 = vector.extract_strided_slice %13 {offsets = [8, 256], sizes = [8, 64], strides = [1, 1]} : vector<16x384xbf16> to vector<8x64xbf16>
    %210 = vector.extract_strided_slice %14 {offsets = [8, 256], sizes = [8, 64], strides = [1, 1]} : vector<16x384xbf16> to vector<8x64xbf16>
    %cst_74 = arith.constant dense<0.000000e+00> : vector<8x8xf32>
    %211 = tpu.matmul %208, %209, %cst_74 {dimension_numbers = #tpu.dot_dimension_numbers<[1], [1], [0], [0], [0, 0, 1, 0], [], []>} : vector<8x64xbf16>, vector<8x64xbf16>, vector<8x8xf32> -> vector<8x8xf32>
    %cst_75 = arith.constant -1.000000e+30 : f32
    %212 = vector.broadcast %cst_75 : f32 to vector<8x8xf32>
    %213 = arith.select %17, %211, %212 : vector<8x8xi1>, vector<8x8xf32>
    %cst_76 = arith.constant dense<0xFF800000> : vector<8xf32>
    %214 = vector.multi_reduction <maximumf>, %213, %cst_76 [1] : vector<8x8xf32> to vector<8xf32>
    %215 = vector.shape_cast %214 : vector<8xf32> to vector<8x1xf32>
    %216 = vector.broadcast %215 : vector<8x1xf32> to vector<8x8xf32>
    %217 = arith.subf %213, %216 : vector<8x8xf32>
    %218 = math.exp %217 : vector<8x8xf32>
    %cst_77 = arith.constant dense<0.000000e+00> : vector<8xf32>
    %219 = vector.multi_reduction <add>, %218, %cst_77 [1] : vector<8x8xf32> to vector<8xf32>
    %220 = vector.shape_cast %219 : vector<8xf32> to vector<8x1xf32>
    %221 = tpu.reciprocal %220 {approx = true} : vector<8x1xf32> -> vector<8x1xf32>
    %222 = vector.broadcast %221 : vector<8x1xf32> to vector<8x8xf32>
    %223 = arith.mulf %218, %222 : vector<8x8xf32>
    %224 = arith.truncf %223 : vector<8x8xf32> to vector<8x8xbf16>
    %cst_78 = arith.constant dense<0.000000e+00> : vector<8x64xf32>
    %225 = tpu.matmul %224, %210, %cst_78 {dimension_numbers = #tpu.dot_dimension_numbers<[1], [0], [0], [1], [0, 0, 1, 1], [], []>} : vector<8x8xbf16>, vector<8x64xbf16>, vector<8x64xf32> -> vector<8x64xf32>
    %c8_79 = arith.constant 8 : index
    %c256_80 = arith.constant 256 : index
    %226 = vector.load %arg7[%c8_79, %c256_80] : memref<16x384xf32, #tpu.memory_space<vmem>>, vector<8x64xf32>
    tpu.vector_store %arg7[%c8_79, %c256_80], %225 {strides = array<i32>} : memref<16x384xf32, #tpu.memory_space<vmem>>, vector<8x64xf32>,
    %227 = vector.extract_strided_slice %12 {offsets = [8, 320], sizes = [8, 64], strides = [1, 1]} : vector<16x384xbf16> to vector<8x64xbf16>
    %228 = vector.extract_strided_slice %13 {offsets = [8, 320], sizes = [8, 64], strides = [1, 1]} : vector<16x384xbf16> to vector<8x64xbf16>
    %229 = vector.extract_strided_slice %14 {offsets = [8, 320], sizes = [8, 64], strides = [1, 1]} : vector<16x384xbf16> to vector<8x64xbf16>
    %cst_81 = arith.constant dense<0.000000e+00> : vector<8x8xf32>
    %230 = tpu.matmul %227, %228, %cst_81 {dimension_numbers = #tpu.dot_dimension_numbers<[1], [1], [0], [0], [0, 0, 1, 0], [], []>} : vector<8x64xbf16>, vector<8x64xbf16>, vector<8x8xf32> -> vector<8x8xf32>
    %cst_82 = arith.constant -1.000000e+30 : f32
    %231 = vector.broadcast %cst_82 : f32 to vector<8x8xf32>
    %232 = arith.select %17, %230, %231 : vector<8x8xi1>, vector<8x8xf32>
    %cst_83 = arith.constant dense<0xFF800000> : vector<8xf32>
    %233 = vector.multi_reduction <maximumf>, %232, %cst_83 [1] : vector<8x8xf32> to vector<8xf32>
    %234 = vector.shape_cast %233 : vector<8xf32> to vector<8x1xf32>
    %235 = vector.broadcast %234 : vector<8x1xf32> to vector<8x8xf32>
    %236 = arith.subf %232, %235 : vector<8x8xf32>
    %237 = math.exp %236 : vector<8x8xf32>
    %cst_84 = arith.constant dense<0.000000e+00> : vector<8xf32>
    %238 = vector.multi_reduction <add>, %237, %cst_84 [1] : vector<8x8xf32> to vector<8xf32>
    %239 = vector.shape_cast %238 : vector<8xf32> to vector<8x1xf32>
    %240 = tpu.reciprocal %239 {approx = true} : vector<8x1xf32> -> vector<8x1xf32>
    %241 = vector.broadcast %240 : vector<8x1xf32> to vector<8x8xf32>
    %242 = arith.mulf %237, %241 : vector<8x8xf32>
    %243 = arith.truncf %242 : vector<8x8xf32> to vector<8x8xbf16>
    %cst_85 = arith.constant dense<0.000000e+00> : vector<8x64xf32>
    %244 = tpu.matmul %243, %229, %cst_85 {dimension_numbers = #tpu.dot_dimension_numbers<[1], [0], [0], [1], [0, 0, 1, 1], [], []>} : vector<8x8xbf16>, vector<8x64xbf16>, vector<8x64xf32> -> vector<8x64xf32>
    %c8_86 = arith.constant 8 : index
    %c320_87 = arith.constant 320 : index
    %245 = vector.load %arg7[%c8_86, %c320_87] : memref<16x384xf32, #tpu.memory_space<vmem>>, vector<8x64xf32>
    tpu.vector_store %arg7[%c8_86, %c320_87], %244 {strides = array<i32>} : memref<16x384xf32, #tpu.memory_space<vmem>>, vector<8x64xf32>,
    %c0_88 = arith.constant 0 : index
    %c0_89 = arith.constant 0 : index
    %246 = vector.load %arg7[%c0_88, %c0_89] : memref<16x384xf32, #tpu.memory_space<vmem>>, vector<16x384xf32>
    %247 = arith.truncf %246 : vector<16x384xf32> to vector<16x384xbf16>
    %cst_90 = arith.constant dense<0.000000e+00> : vector<16x384xf32>
    %248 = tpu.matmul %247, %5, %cst_90 {dimension_numbers = #tpu.dot_dimension_numbers<[1], [0], [0], [1], [0, 0, 1, 1], [], []>} : vector<16x384xbf16>, vector<384x384xbf16>, vector<16x384xf32> -> vector<16x384xf32>
    %249 = arith.extf %6 : vector<1x384xbf16> to vector<1x384xf32>
    %250 = vector.broadcast %249 : vector<1x384xf32> to vector<16x384xf32>
    %251 = arith.addf %248, %250 : vector<16x384xf32>
    %252 = vector.shape_cast %251 : vector<16x384xf32> to vector<2x8x384xf32>
    %c0_91 = arith.constant 0 : index
    %c0_92 = arith.constant 0 : index
    %c0_93 = arith.constant 0 : index
    %253 = vector.load %arg6[%c0_91, %c0_92, %c0_93] : memref<2x8x384xf32, #tpu.memory_space<vmem>>, vector<2x8x384xf32>
    tpu.vector_store %arg6[%c0_91, %c0_92, %c0_93], %252 {strides = array<i32>} : memref<2x8x384xf32, #tpu.memory_space<vmem>>, vector<2x8x384xf32>,
    return
  }
  func.func @transform_0(%arg0: i32) -> (i32, i32, i32) {
    %c0_i32 = arith.constant 0 : i32
    %c0_i32_0 = arith.constant 0 : i32
    %c0_i32_1 = arith.constant 0 : i32
    return %arg0, %c0_i32, %c0_i32_0 : i32, i32, i32
  }
  func.func @transform_1(%arg0: i32) -> (i32, i32) {
    %c0_i32 = arith.constant 0 : i32
    %c0_i32_0 = arith.constant 0 : i32
    %c0_i32_1 = arith.constant 0 : i32
    return %c0_i32, %c0_i32_0 : i32, i32
  }
  func.func @transform_2(%arg0: i32) -> (i32, i32) {
    %c0_i32 = arith.constant 0 : i32
    %c0_i32_0 = arith.constant 0 : i32
    %c0_i32_1 = arith.constant 0 : i32
    return %c0_i32, %c0_i32_0 : i32, i32
  }
  func.func @transform_3(%arg0: i32) -> (i32, i32) {
    %c0_i32 = arith.constant 0 : i32
    %c0_i32_0 = arith.constant 0 : i32
    %c0_i32_1 = arith.constant 0 : i32
    return %c0_i32, %c0_i32_0 : i32, i32
  }
  func.func @transform_4(%arg0: i32) -> (i32, i32) {
    %c0_i32 = arith.constant 0 : i32
    %c0_i32_0 = arith.constant 0 : i32
    %c0_i32_1 = arith.constant 0 : i32
    return %c0_i32, %c0_i32_0 : i32, i32
  }
  func.func @transform_5(%arg0: i32) -> (i32, i32, i32) {
    %c0_i32 = arith.constant 0 : i32
    %c0_i32_0 = arith.constant 0 : i32
    %c0_i32_1 = arith.constant 0 : i32
    return %arg0, %c0_i32, %c0_i32_0 : i32, i32, i32
  }
}

</mosaic_0001>

<bundles_post_ra>
// kernel: tpu_custom_call.1
= control target key start
LH: loop header
LB: loop body
LE: loop exit
PB: predicated region body
PF: predicated region fallthrough
CT: control target
= control target key end

     0   :  { %10 = vsyncpa [#allocation4], 0  ;;  %s5835_s0 = inlined_call_operand.hbm [shape: f32[2,8,384], index: 0, kind: input, shape index: {}]   ;;  %s5836_s1 = inlined_call_operand.hbm [shape: bf16[384,1152], index: 1, kind: input, shape index: {}]   ;;  %s5837_s2 = inlined_call_operand.hbm [shape: bf16[1,1152], index: 2, kind: input, shape index: {}]   ;;  %s5838_s3 = inlined_call_operand.hbm [shape: bf16[384,384], index: 3, kind: input, shape index: {}]   ;;  %s5839_s4 = inlined_call_operand.vmem [shape: bf16[1,384], index: 4, kind: input, shape index: {}]   ;;  %s5840_s5 = inlined_call_operand.hbm [shape: f32[2,8,384], index: 5, kind: output, shape index: {}]  }
   0x1   :  { %11 = vsyncpa [#allocation7], 0 }
   0x2   :  { %12 = vsyncpa [#allocation10], 0 }
   0x3   :  { %13 = vsyncpa [#allocation5], 0  ;;  %s5258_s18 = smov [#allocation6]   ;;  %s5140_s22 = scalar_lea.hbm %s5836_s1, 27648 }
   0x4   :  { %s31_s19 = sshll.u32 %s5258_s18, 4  ;;  %p5141_p0 = scmp.ne.s32.totalorder %s5836_s1, %s5140_s22  ;;  %s32_s19 = int_to_ptr.vmem [resolvable:$true] %s31_s19 }
   0x5   :  { %p5144_p1 = scmp.lt.u32.totalorder %s5140_s22, %s5836_s1 }
   0x7   :  { %p5146_p2 = pnand %p5144_p1, %p5141_p0 }
   0x9   :  { %5149 = shalt.err (!%p5146_p2)
}
   0xa   :  { %s5150_s27 = scalar_lea.vmem %s32_s19, 27648  ;;  %p5155_p4 = scmp.lt.s32.totalorder %s32_s19, %s32_s19 }
   0xb   :  { %p5151_p3 = scmp.ne.s32.totalorder %s32_s19, %s5150_s27  ;;  %p5156_p5 = scmp.lt.s32.totalorder %s5150_s27, %s5150_s27 }
   0xd   :  { %p5157_p6 = por %p5156_p5, %p5155_p4 }
   0xf   :  { %p5158_p7 = pnand %p5157_p6, %p5151_p3 }
  0x11   :  { %5161 = shalt.err (!%p5158_p7)
}
  0x12   :  { %s5259_s28 = smov 576   ;;  %s5260_s29 = smov 36  }
  0x13   :  { %37 = dma.hbm_to_vmem [thread:$0]  %s5836_s1, 27648, %s32_s19, [#allocation7], %s5259_s28, %s5259_s28, %s5260_s29  }
  0x14   :  { %s5261_s7 = smov [#allocation3]   ;;  %s5162_s11 = scalar_lea.hbm %s5835_s0, 768 }
  0x15   :  { %s19_s8 = sshll.u32 %s5261_s7, 4  ;;  %p5163_p8 = scmp.ne.s32.totalorder %s5835_s0, %s5162_s11  ;;  %s20_s8 = int_to_ptr.vmem [resolvable:$true] %s19_s8 }
  0x16   :  { %p5166_p9 = scmp.lt.u32.totalorder %s5162_s11, %s5835_s0 }
  0x18   :  { %p5168_p10 = pnand %p5166_p9, %p5163_p8 }
  0x1a   :  { %5171 = shalt.err (!%p5168_p10)
}
  0x1b   :  { %s5172_s16 = scalar_lea.vmem %s20_s8, 768  ;;  %p5177_p12 = scmp.lt.s32.totalorder %s20_s8, %s20_s8 }
  0x1c   :  { %p5173_p11 = scmp.ne.s32.totalorder %s20_s8, %s5172_s16  ;;  %p5178_p13 = scmp.lt.s32.totalorder %s5172_s16, %s5172_s16 }
  0x1e   :  { %p5179_p0 = por %p5178_p13, %p5177_p12 }
  0x20   :  { %p5180_p1 = pnand %p5179_p0, %p5173_p11 }
  0x22   :  { %5183 = shalt.err (!%p5180_p1)
}
  0x23   :  { %s5262_s1 = smov 384   ;;  %s5263_s17 = smov 24  }
  0x24   :  { %25 = dma.hbm_to_vmem [thread:$0]  %s5835_s0, 768, %s20_s8, [#allocation4], %s5262_s1, %s5262_s1, %s5263_s17  }
  0x25   :  { %s5264_s20 = smov [#allocation8]   ;;  %s5265_s22 = smov [#allocation9]  }
  0x26   :  { %s44_s21 = sshll.u32 %s5264_s20, 4  ;;  %s53_s23 = sshll.u32 %s5265_s22, 4  ;;  %s45_s21 = int_to_ptr.vmem [resolvable:$true] %s44_s21  ;;  %s5330_s23 = int_to_ptr.vmem [resolvable:$true] %s53_s23 }
  0x27   :  { %s5184_s26 = scalar_lea.hbm %s5837_s2, 144 }
  0x28   :  { %p5185_p2 = scmp.ne.s32.totalorder %s5837_s2, %s5184_s26  ;;  %p5188_p3 = scmp.lt.u32.totalorder %s5184_s26, %s5837_s2 }
  0x2a   :  { %p5190_p4 = pnand %p5188_p3, %p5185_p2 }
  0x2c   :  { %5193 = shalt.err (!%p5190_p4)
}
  0x2d   :  { %s5194_s0 = scalar_lea.vmem %s45_s21, 144  ;;  %s5198_s6 = scalar_lea.vmem %s45_s21, 160 }
  0x2e   :  { %p5195_p5 = scmp.ne.s32.totalorder %s45_s21, %s5194_s0  ;;  %p5199_p6 = scmp.lt.s32.totalorder %s45_s21, %s45_s21 }
  0x2f   :  { %p5200_p7 = scmp.lt.s32.totalorder %s5198_s6, %s5194_s0 }
  0x31   :  { %p5201_p8 = por %p5200_p7, %p5199_p6 }
  0x33   :  { %p5202_p9 = pnand %p5201_p8, %p5195_p5 }
  0x35   :  { %5205 = shalt.err (!%p5202_p9)
}
  0x36   :  { %47 = dma.hbm_to_vmem [thread:$0]  %s5837_s2, 144, %s45_s21, [#allocation7]  }
  0x37   :  { %s5206_s11 = scalar_lea.hbm %s5838_s3, 9216 }
  0x38   :  { %p5207_p10 = scmp.ne.s32.totalorder %s5838_s3, %s5206_s11  ;;  %p5210_p11 = scmp.lt.u32.totalorder %s5206_s11, %s5838_s3 }
  0x3a   :  { %p5212_p12 = pnand %p5210_p11, %p5207_p10 }
  0x3c   :  { %5215 = shalt.err (!%p5212_p12)
}
  0x3d   :  { %s5216_s16 = scalar_lea.vmem %s5330_s23, 9216  ;;  %p5221_p0 = scmp.lt.s32.totalorder %s5330_s23, %s5330_s23 }
  0x3e   :  { %p5217_p13 = scmp.ne.s32.totalorder %s5330_s23, %s5216_s16  ;;  %p5222_p1 = scmp.lt.s32.totalorder %s5216_s16, %s5216_s16 }
  0x40   :  { %p5223_p2 = por %p5222_p1, %p5221_p0 }
  0x42   :  { %p5224_p3 = pnand %p5223_p2, %p5217_p13 }
  0x44   :  { %5227 = shalt.err (!%p5224_p3)
}
  0x45   :  { %s5266_s2 = smov 192   ;;  %s5267_s18 = smov 12  }
  0x46   :  { %59 = dma.hbm_to_vmem [thread:$0]  %s5838_s3, 9216, %s5330_s23, [#allocation10], %s5266_s2, %s5266_s2, %s5267_s18  }
  0x47   :  { %5250 = dma.done.wait [#allocation4], 768  }
  0x48   :  { %5251 = vsyncadd [#allocation4], 4294966528 }
  0x49   :  { %5252 = dma.done.wait [#allocation7], 27792  }
  0x4a   :  { %5253 = vsyncadd [#allocation7], 4294939504 }
  0x4b   :  { %5254 = dma.done.wait [#allocation10], 9216  }
  0x4c   :  { %5255 = vsyncadd [#allocation10], 4294958080  ;;  %v4684_v0 = vld [vmem:[#allocation6 + $0x4] ss:$36 sps:$4 sm:$0xff]   ;;  %v4686_v1 = vld [vmem:[#allocation6 + $0xc] ss:$36 sps:$4 sm:$0xff]  }
  0x4d   :  { %1614 = vmatprep.subr.bf16.mxu0 %v4684_v0  ;;  %v4688_v2 = vld [vmem:[#allocation6] ss:$36 sps:$4 sm:$0xff]   ;;  %v4689_v3 = vld [vmem:[#allocation6 + $0x8] ss:$36 sps:$4 sm:$0xff]   ;;  %1700 = vmatprep.subr.bf16.mxu1 %v4686_v1  ;;  %v4692_v5 = vld [vmem:[#allocation6 + $0x54] ss:$36 sps:$4 sm:$0xff]  }
  0x4e   :  { %v4690_v4 = vld [vmem:[#allocation6 + $0x4c] ss:$36 sps:$4 sm:$0xff]   ;;  %1615 = vmatpush1.bf16.msra.mxu0 %v4688_v2  ;;  %1701 = vmatpush1.bf16.msra.mxu1 %v4689_v3  ;;  %v4696_v8 = vld [vmem:[#allocation6 + $0x94] ss:$36 sps:$4 sm:$0xff]   ;;  %v4698_v9 = vld [vmem:[#allocation6 + $0x9c] ss:$36 sps:$4 sm:$0xff]  }
  0x4f   :  { %v4694_v6 = vld [vmem:[#allocation6 + $0x48] ss:$36 sps:$4 sm:$0xff]   ;;  %1616 = vmatprep.subr.bf16.mxu0 %v4690_v4  ;;  %v4695_v7 = vld [vmem:[#allocation6 + $0x50] ss:$36 sps:$4 sm:$0xff]   ;;  %1702 = vmatprep.subr.bf16.mxu1 %v4692_v5  ;;  %v4701_v11 = vld [vmem:[#allocation6 + $0x98] ss:$36 sps:$4 sm:$0xff]  }
  0x50   :  { %v4700_v10 = vld [vmem:[#allocation6 + $0x90] ss:$36 sps:$4 sm:$0xff]   ;;  %v4702_v12 = vld [vmem:[#allocation6 + $0xdc] ss:$36 sps:$4 sm:$0xff]   ;;  %v4704_v13 = vld [vmem:[#allocation6 + $0xe4] ss:$36 sps:$4 sm:$0xff]  }
  0x51   :  { %v4706_v14 = vld [vmem:[#allocation6 + $0xd8] ss:$36 sps:$4 sm:$0xff]   ;;  %v4707_v15 = vld [vmem:[#allocation6 + $0xe0] ss:$36 sps:$4 sm:$0xff]   ;;  %v4710_v17 = vld [vmem:[#allocation6 + $0x12c] ss:$36 sps:$4 sm:$0xff]  }
  0x52   :  { %1617 = vmatpush1.bf16.msra.mxu0 %v4694_v6  ;;  %1703 = vmatpush1.bf16.msra.mxu1 %v4695_v7  ;;  %v4708_v16 = vld [vmem:[#allocation6 + $0x124] ss:$36 sps:$4 sm:$0xff]   ;;  %v4714_v20 = vld [vmem:[#allocation6 + $0x16c] ss:$36 sps:$4 sm:$0xff]   ;;  %v4716_v21 = vld [vmem:[#allocation6 + $0x174] ss:$36 sps:$4 sm:$0xff]  }
  0x53   :  { %1618 = vmatprep.subr.bf16.mxu0 %v4696_v8  ;;  %1704 = vmatprep.subr.bf16.mxu1 %v4698_v9  ;;  %v4712_v18 = vld [vmem:[#allocation6 + $0x120] ss:$36 sps:$4 sm:$0xff]   ;;  %v4713_v19 = vld [vmem:[#allocation6 + $0x128] ss:$36 sps:$4 sm:$0xff]   ;;  %v4719_v23 = vld [vmem:[#allocation6 + $0x170] ss:$36 sps:$4 sm:$0xff]  }
  0x54   :  { %v4718_v22 = vld [vmem:[#allocation6 + $0x168] ss:$36 sps:$4 sm:$0xff]   ;;  %v4720_v24 = vld [vmem:[#allocation6 + $0x1b4] ss:$36 sps:$4 sm:$0xff]   ;;  %v4722_v25 = vld [vmem:[#allocation6 + $0x1bc] ss:$36 sps:$4 sm:$0xff]  }
  0x55   :  { %v4724_v26 = vld [vmem:[#allocation6 + $0x1b0] ss:$36 sps:$4 sm:$0xff]   ;;  %v4725_v27 = vld [vmem:[#allocation6 + $0x1b8] ss:$36 sps:$4 sm:$0xff]   ;;  %v4728_v29 = vld [vmem:[#allocation6 + $0x204] ss:$36 sps:$4 sm:$0xff]  }
  0x56   :  { %1619 = vmatpush1.bf16.msra.mxu0 %v4700_v10  ;;  %1705 = vmatpush1.bf16.msra.mxu1 %v4701_v11  ;;  %v4726_v28 = vld [vmem:[#allocation6 + $0x1fc] ss:$36 sps:$4 sm:$0xff]   ;;  %v4732_v32 = vld [vmem:[#allocation6 + $0x244] ss:$36 sps:$4 sm:$0xff]   ;;  %v4734_v33 = vld [vmem:[#allocation6 + $0x24c] ss:$36 sps:$4 sm:$0xff]  }
  0x57   :  { %1620 = vmatprep.subr.bf16.mxu0 %v4702_v12  ;;  %1706 = vmatprep.subr.bf16.mxu1 %v4704_v13  ;;  %v4730_v30 = vld [vmem:[#allocation6 + $0x1f8] ss:$36 sps:$4 sm:$0xff]   ;;  %v4731_v31 = vld [vmem:[#allocation6 + $0x200] ss:$36 sps:$4 sm:$0xff]   ;;  %v4737_v35 = vld [vmem:[#allocation6 + $0x248] ss:$36 sps:$4 sm:$0xff]  }
  0x58   :  { %v4736_v34 = vld [vmem:[#allocation6 + $0x240] ss:$36 sps:$4 sm:$0xff]   ;;  %v4738_v36 = vld [vmem:[#allocation6 + $0x28c] ss:$36 sps:$4 sm:$0xff]   ;;  %v4740_v37 = vld [vmem:[#allocation6 + $0x294] ss:$36 sps:$4 sm:$0xff]  }
  0x59   :  { %v4742_v38 = vld [vmem:[#allocation6 + $0x288] ss:$36 sps:$4 sm:$0xff]   ;;  %v4743_v39 = vld [vmem:[#allocation6 + $0x290] ss:$36 sps:$4 sm:$0xff]   ;;  %v4746_v41 = vld [vmem:[#allocation6 + $0x2dc] ss:$36 sps:$4 sm:$0xff]  }
  0x5a   :  { %1621 = vmatpush1.bf16.msra.mxu0 %v4706_v14  ;;  %1707 = vmatpush1.bf16.msra.mxu1 %v4707_v15  ;;  %v4744_v40 = vld [vmem:[#allocation6 + $0x2d4] ss:$36 sps:$4 sm:$0xff]   ;;  %v4750_v44 = vld [vmem:[#allocation6 + $0x31c] ss:$36 sps:$4 sm:$0xff]   ;;  %v4752_v45 = vld [vmem:[#allocation6 + $0x324] ss:$36 sps:$4 sm:$0xff]  }
  0x5b   :  { %1622 = vmatprep.subr.bf16.mxu0 %v4708_v16  ;;  %1708 = vmatprep.subr.bf16.mxu1 %v4710_v17  ;;  %v4748_v42 = vld [vmem:[#allocation6 + $0x2d0] ss:$36 sps:$4 sm:$0xff]   ;;  %v4749_v43 = vld [vmem:[#allocation6 + $0x2d8] ss:$36 sps:$4 sm:$0xff]   ;;  %v4755_v49 = vld [vmem:[#allocation6 + $0x320] ss:$36 sps:$4 sm:$0xff]  }
  0x5c   :  { %v76_v46 = vld [vmem:[#allocation3 + $0x8] sm:$0xff]  ;;  %v79_v47 = vld [vmem:[#allocation3 + $0x20] sm:$0xff]  ;;  %v4756_v51 = vld [vmem:[#allocation6 + $0x364] ss:$36 sps:$4 sm:$0xff]   ;;  %v5268_v16 = vmov 0   ;;  %vm5270_vm0 = vmmov 0  }
  0x5d   :  { %v4754_v48 = vld [vmem:[#allocation6 + $0x318] ss:$36 sps:$4 sm:$0xff]   ;;  %v5361_v50 = vpack.c.bf16 %v79_v47, %v76_v46  ;;  %v4758_v52 = vld [vmem:[#allocation6 + $0x36c] ss:$36 sps:$4 sm:$0xff]   ;;  %v4760_v53 = vld [vmem:[#allocation6 + $0x360] ss:$36 sps:$4 sm:$0xff]  }
  0x5e   :  { %1623 = vmatpush1.bf16.msra.mxu0 %v4712_v18  ;;  %1709 = vmatpush1.bf16.msra.mxu1 %v4713_v19  ;;  %v4761_v54 = vld [vmem:[#allocation6 + $0x368] ss:$36 sps:$4 sm:$0xff]   ;;  %v4764_v56 = vld [vmem:[#allocation6 + $0x3b4] ss:$36 sps:$4 sm:$0xff]   ;;  %v4770_v60 = vld [vmem:[#allocation6 + $0x3fc] ss:$36 sps:$4 sm:$0xff]  }
  0x5f   :  { %1624 = vmatprep.subr.bf16.mxu0 %v4714_v20  ;;  %1710 = vmatprep.subr.bf16.mxu1 %v4716_v21  ;;  %v4762_v55 = vld [vmem:[#allocation6 + $0x3ac] ss:$36 sps:$4 sm:$0xff]   ;;  %v4768_v59 = vld [vmem:[#allocation6 + $0x3f4] ss:$36 sps:$4 sm:$0xff]   ;;  %v4774_v63 = vld [vmem:[#allocation6 + $0x43c] ss:$36 sps:$4 sm:$0xff]  }
  0x60   :  { %1646 = vmatprep.mubr.bf16.mxu0 %v5361_v50  ;;  %1732 = vmatprep.mubr.bf16.mxu1 %v5361_v50  ;;  %v4766_v57 = vld [vmem:[#allocation6 + $0x3a8] ss:$36 sps:$4 sm:$0xff]   ;;  %v4767_v58 = vld [vmem:[#allocation6 + $0x3b0] ss:$36 sps:$4 sm:$0xff]   ;;  %v4773_v62 = vld [vmem:[#allocation6 + $0x3f8] ss:$36 sps:$4 sm:$0xff]  }
  0x61   :  { %v4772_v61 = vld [vmem:[#allocation6 + $0x3f0] ss:$36 sps:$4 sm:$0xff]   ;;  %v4776_v0 = vld [vmem:[#allocation6 + $0x444] ss:$36 sps:$4 sm:$0xff]   ;;  %v4778_v1 = vld [vmem:[#allocation6 + $0x438] ss:$36 sps:$4 sm:$0xff]  }
  0x62   :  { %1625 = vmatpush1.bf16.msra.mxu0 %v4718_v22  ;;  %1711 = vmatpush1.bf16.msra.mxu1 %v4719_v23  ;;  %v4779_v2 = vld [vmem:[#allocation6 + $0x440] ss:$36 sps:$4 sm:$0xff]   ;;  %v75_v4 = vld [vmem:[#allocation3] sm:$0xff]  ;;  %v78_v5 = vld [vmem:[#allocation3 + $0x18] sm:$0xff]  ;;  %vm2054_vm1 = vcmask 523264   ;;  %s5271_s3 = smov 64  }
  0x63   :  { %1626 = vmatprep.subr.bf16.mxu0 %v4720_v24  ;;  %1712 = vmatprep.subr.bf16.mxu1 %v4722_v25  ;;  %v4782_v3 = vld [vmem:[#allocation6 + $0x484] ss:$36 sps:$4 sm:$0xff]   ;;  %v4785_v6 = vld [vmem:[#allocation6 + $0x48c] ss:$36 sps:$4 sm:$0xff]   ;;  %v5365_v8 = vpack.c.bf16 %v78_v5, %v75_v4  ;;  %v4791_v11 = vld [vmem:[#allocation6 + $0x4d4] ss:$36 sps:$4 sm:$0xff]  }
  0x64   :  { %v4780_v7 = vld [vmem:[#allocation6 + $0x480] ss:$36 sps:$4 sm:$0xff]   ;;  %v4783_v9 = vld [vmem:[#allocation6 + $0x488] ss:$36 sps:$4 sm:$0xff]   ;;  %v4789_v13 = vld [vmem:[#allocation6 + $0x4d0] ss:$36 sps:$4 sm:$0xff]  }
  0x65   :  { %v4788_v10 = vld [vmem:[#allocation6 + $0x4cc] ss:$36 sps:$4 sm:$0xff]   ;;  %v4794_v14 = vld [vmem:[#allocation6 + $0x514] ss:$36 sps:$4 sm:$0xff]   ;;  %v4797_v15 = vld [vmem:[#allocation6 + $0x51c] ss:$36 sps:$4 sm:$0xff]  }
  0x66   :  { %1627 = vmatpush1.bf16.msra.mxu0 %v4724_v26  ;;  %1713 = vmatpush1.bf16.msra.mxu1 %v4725_v27  ;;  %v4786_v12 = vld [vmem:[#allocation6 + $0x4c8] ss:$36 sps:$4 sm:$0xff]   ;;  %v4792_v17 = vld [vmem:[#allocation6 + $0x510] ss:$36 sps:$4 sm:$0xff]   ;;  %v4795_v18 = vld [vmem:[#allocation6 + $0x518] ss:$36 sps:$4 sm:$0xff]  }
  0x67   :  { %1628 = vmatprep.subr.bf16.mxu0 %v4726_v28  ;;  %1714 = vmatprep.subr.bf16.mxu1 %v4728_v29  ;;  %v4800_v19 = vld [vmem:[#allocation6 + $0x55c] ss:$36 sps:$4 sm:$0xff]   ;;  %v4803_v20 = vld [vmem:[#allocation6 + $0x564] ss:$36 sps:$4 sm:$0xff]   ;;  %v4809_v24 = vld [vmem:[#allocation6 + $0x5ac] ss:$36 sps:$4 sm:$0xff]  }
  0x68   :  { %v4798_v21 = vld [vmem:[#allocation6 + $0x558] ss:$36 sps:$4 sm:$0xff]   ;;  %v4801_v22 = vld [vmem:[#allocation6 + $0x560] ss:$36 sps:$4 sm:$0xff]   ;;  %v4807_v26 = vld [vmem:[#allocation6 + $0x5a8] ss:$36 sps:$4 sm:$0xff]  }
  0x69   :  { %v4806_v23 = vld [vmem:[#allocation6 + $0x5a4] ss:$36 sps:$4 sm:$0xff]   ;;  %v4812_v27 = vld [vmem:[#allocation6 + $0x5ec] ss:$36 sps:$4 sm:$0xff]   ;;  %v4815_v28 = vld [vmem:[#allocation6 + $0x5f4] ss:$36 sps:$4 sm:$0xff]  }
  0x6a   :  { %1629 = vmatpush1.bf16.msra.mxu0 %v4730_v30  ;;  %1715 = vmatpush1.bf16.msra.mxu1 %v4731_v31  ;;  %v4804_v25 = vld [vmem:[#allocation6 + $0x5a0] ss:$36 sps:$4 sm:$0xff]   ;;  %v4810_v29 = vld [vmem:[#allocation6 + $0x5e8] ss:$36 sps:$4 sm:$0xff]   ;;  %v4813_v30 = vld [vmem:[#allocation6 + $0x5f0] ss:$36 sps:$4 sm:$0xff]  }
  0x6b   :  { %1630 = vmatprep.subr.bf16.mxu0 %v4732_v32  ;;  %1716 = vmatprep.subr.bf16.mxu1 %v4734_v33  ;;  %v4818_v31 = vld [vmem:[#allocation6 + $0x634] ss:$36 sps:$4 sm:$0xff]   ;;  %v4821_v32 = vld [vmem:[#allocation6 + $0x63c] ss:$36 sps:$4 sm:$0xff]   ;;  %v4878_v47 = vld [vmem:[#allocation6 + $0x64] ss:$36 sps:$4 sm:$0xff]  }
  0x6c   :  { %v4816_v33 = vld [vmem:[#allocation6 + $0x630] ss:$36 sps:$4 sm:$0xff]   ;;  %v4833_v46 = vld [vmem:[#allocation6 + $0x5c] ss:$36 sps:$4 sm:$0xff]   ;;  %vm2118_vm2 = vcmask 1043456   ;;  %vm2102_vm4 = vcmask 64512  }
  0x6d   :  { %v4908_v4 = vld [vmem:[#allocation6 + $0x1cc] ss:$36 sps:$4 sm:$0xff]   ;;  %v4846_v5 = vld [vmem:[#allocation6 + $0x1c0] ss:$36 sps:$4 sm:$0xff]   ;;  %vm2281_vm5 = vcmask 1048064  }
  0x6e   :  { %1631 = vmatpush1.bf16.msra.mxu0 %v4736_v34  ;;  %1717 = vmatpush1.bf16.msra.mxu1 %v4737_v35  ;;  %v4819_v34 = vld [vmem:[#allocation6 + $0x638] ss:$36 sps:$4 sm:$0xff]  }
  0x6f   :  { %1632 = vmatprep.subr.bf16.mxu0 %v4738_v36  ;;  %1718 = vmatprep.subr.bf16.mxu1 %v4740_v37  ;;  %v4824_v35 = vld [vmem:[#allocation6 + $0x67c] ss:$36 sps:$4 sm:$0xff]   ;;  %v4827_v36 = vld [vmem:[#allocation6 + $0x684] ss:$36 sps:$4 sm:$0xff]  }
  0x70   :  { %v4822_v37 = vld [vmem:[#allocation6 + $0x678] ss:$36 sps:$4 sm:$0xff]  }
  0x72   :  { %1633 = vmatpush1.bf16.msra.mxu0 %v4742_v38  ;;  %1719 = vmatpush1.bf16.msra.mxu1 %v4743_v39  ;;  %v4825_v38 = vld [vmem:[#allocation6 + $0x680] ss:$36 sps:$4 sm:$0xff]  }
  0x73   :  { %1634 = vmatprep.subr.bf16.mxu0 %v4744_v40  ;;  %1720 = vmatprep.subr.bf16.mxu1 %v4746_v41  ;;  %v77_v39 = vld [vmem:[#allocation3 + $0x10] sm:$0xff]  ;;  %v80_v40 = vld [vmem:[#allocation3 + $0x28] sm:$0xff] }
  0x74   :  { %v4830_v41 = vld [vmem:[#allocation6 + $0x14] ss:$36 sps:$4 sm:$0xff]  }
  0x76   :  { %1635 = vmatpush1.bf16.msra.mxu0 %v4748_v42  ;;  %1721 = vmatpush1.bf16.msra.mxu1 %v4749_v43  ;;  %v4872_v42 = vld [vmem:[#allocation6 + $0x1c] ss:$36 sps:$4 sm:$0xff]   ;;  %v5371_v43 = vpack.c.bf16 %v80_v40, %v77_v39  ;;  %v4881_v40 = vld [vmem:[#allocation6 + $0x44c] ss:$36 sps:$4 sm:$0xff]  }
  0x77   :  { %1636 = vmatprep.subr.bf16.mxu0 %v4750_v44  ;;  %1722 = vmatprep.subr.bf16.mxu1 %v4752_v45  ;;  %v4828_v44 = vld [vmem:[#allocation6 + $0x10] ss:$36 sps:$4 sm:$0xff]   ;;  %v4870_v45 = vld [vmem:[#allocation6 + $0x18] ss:$36 sps:$4 sm:$0xff]   ;;  %v4873_v39 = vld [vmem:[#allocation6 + $0x400] ss:$36 sps:$4 sm:$0xff]  }
  0x7a   :  { %1637 = vmatpush1.bf16.msra.mxu0 %v4754_v48  ;;  %1723 = vmatpush1.bf16.msra.mxu1 %v4755_v49  ;;  %v4831_v48 = vld [vmem:[#allocation6 + $0x58] ss:$36 sps:$4 sm:$0xff]   ;;  %v4876_v49 = vld [vmem:[#allocation6 + $0x60] ss:$36 sps:$4 sm:$0xff]  }
  0x7b   :  { %1638 = vmatprep.subr.bf16.mxu0 %v4756_v51  ;;  %1724 = vmatprep.subr.bf16.mxu1 %v4758_v52  ;;  %v4836_v51 = vld [vmem:[#allocation6 + $0xa4] ss:$36 sps:$4 sm:$0xff]   ;;  %v4884_v52 = vld [vmem:[#allocation6 + $0xac] ss:$36 sps:$4 sm:$0xff]  }
  0x7e   :  { %1639 = vmatpush1.bf16.msra.mxu0 %v4760_v53  ;;  %1725 = vmatpush1.bf16.msra.mxu1 %v4761_v54  ;;  %v4834_v53 = vld [vmem:[#allocation6 + $0xa0] ss:$36 sps:$4 sm:$0xff]   ;;  %v4882_v54 = vld [vmem:[#allocation6 + $0xa8] ss:$36 sps:$4 sm:$0xff]  }
  0x7f   :  { %1640 = vmatprep.subr.bf16.mxu0 %v4762_v55  ;;  %1726 = vmatprep.subr.bf16.mxu1 %v4764_v56  ;;  %v4839_v55 = vld [vmem:[#allocation6 + $0xec] ss:$36 sps:$4 sm:$0xff]   ;;  %v4890_v56 = vld [vmem:[#allocation6 + $0xf4] ss:$36 sps:$4 sm:$0xff]  }
  0x82   :  { %1641 = vmatpush1.bf16.msra.mxu0 %v4766_v57  ;;  %1727 = vmatpush1.bf16.msra.mxu1 %v4767_v58  ;;  %v4837_v57 = vld [vmem:[#allocation6 + $0xe8] ss:$36 sps:$4 sm:$0xff]   ;;  %v4888_v58 = vld [vmem:[#allocation6 + $0xf0] ss:$36 sps:$4 sm:$0xff]  }
  0x83   :  { %1642 = vmatprep.subr.bf16.mxu0 %v4768_v59  ;;  %1728 = vmatprep.subr.bf16.mxu1 %v4770_v60  ;;  %v4842_v59 = vld [vmem:[#allocation6 + $0x134] ss:$36 sps:$4 sm:$0xff]   ;;  %v4896_v60 = vld [vmem:[#allocation6 + $0x13c] ss:$36 sps:$4 sm:$0xff]  }
  0x86   :  { %1643 = vmatpush1.bf16.msra.mxu0 %v4772_v61  ;;  %1729 = vmatpush1.bf16.msra.mxu1 %v4773_v62  ;;  %v4840_v61 = vld [vmem:[#allocation6 + $0x130] ss:$36 sps:$4 sm:$0xff]   ;;  %v4894_v62 = vld [vmem:[#allocation6 + $0x138] ss:$36 sps:$4 sm:$0xff]  }
  0x87   :  { %1644 = vmatprep.subr.bf16.mxu0 %v4774_v63  ;;  %1730 = vmatprep.subr.bf16.mxu1 %v4776_v0  ;;  %v4845_v63 = vld [vmem:[#allocation6 + $0x17c] ss:$36 sps:$4 sm:$0xff]   ;;  %v4902_v0 = vld [vmem:[#allocation6 + $0x184] ss:$36 sps:$4 sm:$0xff]  }
  0x8a   :  { %1645 = vmatpush1.bf16.msra.mxu0 %v4778_v1  ;;  %1731 = vmatpush1.bf16.msra.mxu1 %v4779_v2  ;;  %v4843_v1 = vld [vmem:[#allocation6 + $0x178] ss:$36 sps:$4 sm:$0xff]   ;;  %v4900_v2 = vld [vmem:[#allocation6 + $0x180] ss:$36 sps:$4 sm:$0xff]  }
  0x8b   :  { %1657 = vmatprep.subr.bf16.mxu0 %v4782_v3  ;;  %1743 = vmatprep.subr.bf16.mxu1 %v4785_v6  ;;  %v4848_v3 = vld [vmem:[#allocation6 + $0x1c4] ss:$36 sps:$4 sm:$0xff]  }
  0x8c   :  { %v4906_v6 = vld [vmem:[#allocation6 + $0x1c8] ss:$36 sps:$4 sm:$0xff]  }
  0x8d   :  { %1647 = vmatmul.mubr.bf16.vlgmr.msra.gmra.mrb[0].mxu0 %v5365_v8  ;;  %1733 = vmatmul.mubr.bf16.vlgmr.msra.gmra.mrb[0].mxu1 %v5365_v8 }
  0x8e   :  { %1658 = vmatpush1.bf16.msra.mxu0 %v4780_v7  ;;  %1744 = vmatpush1.bf16.msra.mxu1 %v4783_v9  ;;  %v4851_v7 = vld [vmem:[#allocation6 + $0x20c] ss:$36 sps:$4 sm:$0xff]   ;;  %v4914_v9 = vld [vmem:[#allocation6 + $0x214] ss:$36 sps:$4 sm:$0xff]  }
  0x8f   :  { %1659 = vmatprep.subr.bf16.mxu0 %v4788_v10  ;;  %1745 = vmatprep.subr.bf16.mxu1 %v4791_v11  ;;  %v4849_v10 = vld [vmem:[#allocation6 + $0x208] ss:$36 sps:$4 sm:$0xff]   ;;  %v4912_v11 = vld [vmem:[#allocation6 + $0x210] ss:$36 sps:$4 sm:$0xff]  }
  0x90   :  { %1689 = vmatprep.mubr.bf16.mxu0 %v5268_v16  ;;  %1775 = vmatprep.mubr.bf16.mxu1 %v5268_v16 }
  0x92   :  { %1660 = vmatpush1.bf16.msra.mxu0 %v4786_v12  ;;  %1746 = vmatpush1.bf16.msra.mxu1 %v4789_v13  ;;  %v4854_v12 = vld [vmem:[#allocation6 + $0x254] ss:$36 sps:$4 sm:$0xff]   ;;  %v4920_v13 = vld [vmem:[#allocation6 + $0x25c] ss:$36 sps:$4 sm:$0xff]  }
  0x93   :  { %1661 = vmatprep.subr.bf16.mxu0 %v4794_v14  ;;  %1747 = vmatprep.subr.bf16.mxu1 %v4797_v15  ;;  %v4852_v14 = vld [vmem:[#allocation6 + $0x250] ss:$36 sps:$4 sm:$0xff]   ;;  %v4918_v15 = vld [vmem:[#allocation6 + $0x258] ss:$36 sps:$4 sm:$0xff]  }
  0x96   :  { %1662 = vmatpush1.bf16.msra.mxu0 %v4792_v17  ;;  %1748 = vmatpush1.bf16.msra.mxu1 %v4795_v18  ;;  %v4857_v17 = vld [vmem:[#allocation6 + $0x29c] ss:$36 sps:$4 sm:$0xff]   ;;  %v4926_v18 = vld [vmem:[#allocation6 + $0x2a4] ss:$36 sps:$4 sm:$0xff]  }
  0x97   :  { %1663 = vmatprep.subr.bf16.mxu0 %v4800_v19  ;;  %1749 = vmatprep.subr.bf16.mxu1 %v4803_v20  ;;  %v4855_v19 = vld [vmem:[#allocation6 + $0x298] ss:$36 sps:$4 sm:$0xff]   ;;  %v4860_v20 = vld [vmem:[#allocation6 + $0x2e4] ss:$36 sps:$4 sm:$0xff]  }
  0x9a   :  { %1664 = vmatpush1.bf16.msra.mxu0 %v4798_v21  ;;  %1750 = vmatpush1.bf16.msra.mxu1 %v4801_v22  ;;  %v4924_v21 = vld [vmem:[#allocation6 + $0x2a0] ss:$36 sps:$4 sm:$0xff]   ;;  %v4932_v22 = vld [vmem:[#allocation6 + $0x2ec] ss:$36 sps:$4 sm:$0xff]  }
  0x9b   :  { %1665 = vmatprep.subr.bf16.mxu0 %v4806_v23  ;;  %1751 = vmatprep.subr.bf16.mxu1 %v4809_v24  ;;  %v4858_v23 = vld [vmem:[#allocation6 + $0x2e0] ss:$36 sps:$4 sm:$0xff]   ;;  %v4863_v24 = vld [vmem:[#allocation6 + $0x32c] ss:$36 sps:$4 sm:$0xff]  }
  0x9e   :  { %1666 = vmatpush1.bf16.msra.mxu0 %v4804_v25  ;;  %1752 = vmatpush1.bf16.msra.mxu1 %v4807_v26  ;;  %v4930_v25 = vld [vmem:[#allocation6 + $0x2e8] ss:$36 sps:$4 sm:$0xff]   ;;  %v4935_v26 = vld [vmem:[#allocation6 + $0x334] ss:$36 sps:$4 sm:$0xff]  }
  0x9f   :  { %1667 = vmatprep.subr.bf16.mxu0 %v4812_v27  ;;  %1753 = vmatprep.subr.bf16.mxu1 %v4815_v28  ;;  %v4861_v27 = vld [vmem:[#allocation6 + $0x328] ss:$36 sps:$4 sm:$0xff]   ;;  %v4866_v28 = vld [vmem:[#allocation6 + $0x374] ss:$36 sps:$4 sm:$0xff]  }
  0xa2   :  { %1668 = vmatpush1.bf16.msra.mxu0 %v4810_v29  ;;  %1754 = vmatpush1.bf16.msra.mxu1 %v4813_v30  ;;  %v4933_v29 = vld [vmem:[#allocation6 + $0x330] ss:$36 sps:$4 sm:$0xff]   ;;  %v4938_v30 = vld [vmem:[#allocation6 + $0x37c] ss:$36 sps:$4 sm:$0xff]  }
  0xa3   :  { %1669 = vmatprep.subr.bf16.mxu0 %v4818_v31  ;;  %1755 = vmatprep.subr.bf16.mxu1 %v4821_v32  ;;  %v4864_v31 = vld [vmem:[#allocation6 + $0x370] ss:$36 sps:$4 sm:$0xff]   ;;  %v4869_v32 = vld [vmem:[#allocation6 + $0x3bc] ss:$36 sps:$4 sm:$0xff]  }
  0xa6   :  { %1670 = vmatpush1.bf16.msra.mxu0 %v4816_v33  ;;  %1756 = vmatpush1.bf16.msra.mxu1 %v4819_v34  ;;  %v4936_v33 = vld [vmem:[#allocation6 + $0x378] ss:$36 sps:$4 sm:$0xff]   ;;  %v4941_v34 = vld [vmem:[#allocation6 + $0x3c4] ss:$36 sps:$4 sm:$0xff]  }
  0xa7   :  { %1671 = vmatprep.subr.bf16.mxu0 %v4824_v35  ;;  %1757 = vmatprep.subr.bf16.mxu1 %v4827_v36  ;;  %v4867_v35 = vld [vmem:[#allocation6 + $0x3b8] ss:$36 sps:$4 sm:$0xff]   ;;  %v4875_v36 = vld [vmem:[#allocation6 + $0x404] ss:$36 sps:$4 sm:$0xff]  }
  0xaa   :  { %1672 = vmatpush1.bf16.msra.mxu0 %v4822_v37  ;;  %1758 = vmatpush1.bf16.msra.mxu1 %v4825_v38  ;;  %v4939_v37 = vld [vmem:[#allocation6 + $0x3c0] ss:$36 sps:$4 sm:$0xff]   ;;  %v4944_v38 = vld [vmem:[#allocation6 + $0x40c] ss:$36 sps:$4 sm:$0xff]  }
  0xab   :  { %1786 = vmatprep.subr.bf16.mxu0 %v4830_v41  ;;  %1872 = vmatprep.subr.bf16.mxu1 %v4872_v42  ;;  %v4942_v41 = vld [vmem:[#allocation6 + $0x408] ss:$36 sps:$4 sm:$0xff]   ;;  %v4947_v42 = vld [vmem:[#allocation6 + $0x454] ss:$36 sps:$4 sm:$0xff]  }
  0xad   :  { %1690 = vmatmul.mubr.bf16.vlgmr.msra.gmra.mrb[0].mxu0 %v5371_v43  ;;  %1776 = vmatmul.mubr.bf16.vlgmr.msra.gmra.mrb[0].mxu1 %v5371_v43 }
  0xae   :  { %1787 = vmatpush1.bf16.msra.mxu0 %v4828_v44  ;;  %1873 = vmatpush1.bf16.msra.mxu1 %v4870_v45  ;;  %v4879_v44 = vld [vmem:[#allocation6 + $0x448] ss:$36 sps:$4 sm:$0xff]   ;;  %v4945_v45 = vld [vmem:[#allocation6 + $0x450] ss:$36 sps:$4 sm:$0xff]  }
  0xaf   :  { %1788 = vmatprep.subr.bf16.mxu0 %v4833_v46  ;;  %1874 = vmatprep.subr.bf16.mxu1 %v4878_v47  ;;  %v4887_v46 = vld [vmem:[#allocation6 + $0x494] ss:$36 sps:$4 sm:$0xff]   ;;  %v4950_v47 = vld [vmem:[#allocation6 + $0x49c] ss:$36 sps:$4 sm:$0xff]  }
  0xb0   :  { %1818 = vmatprep.mubr.bf16.mxu0 %v5361_v50  ;;  %1904 = vmatprep.mubr.bf16.mxu1 %v5361_v50 }
  0xb2   :  { %1789 = vmatpush1.bf16.msra.mxu0 %v4831_v48  ;;  %1875 = vmatpush1.bf16.msra.mxu1 %v4876_v49  ;;  %v4885_v48 = vld [vmem:[#allocation6 + $0x490] ss:$36 sps:$4 sm:$0xff]   ;;  %v4893_v49 = vld [vmem:[#allocation6 + $0x4dc] ss:$36 sps:$4 sm:$0xff]  }
  0xb3   :  { %1790 = vmatprep.subr.bf16.mxu0 %v4836_v51  ;;  %1876 = vmatprep.subr.bf16.mxu1 %v4884_v52  ;;  %v4948_v51 = vld [vmem:[#allocation6 + $0x498] ss:$36 sps:$4 sm:$0xff]   ;;  %v4953_v52 = vld [vmem:[#allocation6 + $0x4e4] ss:$36 sps:$4 sm:$0xff]  }
  0xb6   :  { %1791 = vmatpush1.bf16.msra.mxu0 %v4834_v53  ;;  %1877 = vmatpush1.bf16.msra.mxu1 %v4882_v54  ;;  %v4891_v53 = vld [vmem:[#allocation6 + $0x4d8] ss:$36 sps:$4 sm:$0xff]   ;;  %v4899_v54 = vld [vmem:[#allocation6 + $0x524] ss:$36 sps:$4 sm:$0xff]  }
  0xb7   :  { %1792 = vmatprep.subr.bf16.mxu0 %v4839_v55  ;;  %1878 = vmatprep.subr.bf16.mxu1 %v4890_v56  ;;  %v4951_v55 = vld [vmem:[#allocation6 + $0x4e0] ss:$36 sps:$4 sm:$0xff]   ;;  %v4956_v56 = vld [vmem:[#allocation6 + $0x52c] ss:$36 sps:$4 sm:$0xff]  }
  0xba   :  { %1793 = vmatpush1.bf16.msra.mxu0 %v4837_v57  ;;  %1879 = vmatpush1.bf16.msra.mxu1 %v4888_v58  ;;  %v4897_v57 = vld [vmem:[#allocation6 + $0x520] ss:$36 sps:$4 sm:$0xff]   ;;  %v4905_v58 = vld [vmem:[#allocation6 + $0x56c] ss:$36 sps:$4 sm:$0xff]  }
  0xbb   :  { %1794 = vmatprep.subr.bf16.mxu0 %v4842_v59  ;;  %1880 = vmatprep.subr.bf16.mxu1 %v4896_v60  ;;  %v4954_v59 = vld [vmem:[#allocation6 + $0x528] ss:$36 sps:$4 sm:$0xff]   ;;  %v4959_v60 = vld [vmem:[#allocation6 + $0x574] ss:$36 sps:$4 sm:$0xff]  }
  0xbe   :  { %1795 = vmatpush1.bf16.msra.mxu0 %v4840_v61  ;;  %1881 = vmatpush1.bf16.msra.mxu1 %v4894_v62  ;;  %v4903_v61 = vld [vmem:[#allocation6 + $0x568] ss:$36 sps:$4 sm:$0xff]   ;;  %v4911_v62 = vld [vmem:[#allocation6 + $0x5b4] ss:$36 sps:$4 sm:$0xff]  }
  0xbf   :  { %1796 = vmatprep.subr.bf16.mxu0 %v4845_v63  ;;  %1882 = vmatprep.subr.bf16.mxu1 %v4902_v0  ;;  %v4957_v63 = vld [vmem:[#allocation6 + $0x570] ss:$36 sps:$4 sm:$0xff]   ;;  %v4962_v0 = vld [vmem:[#allocation6 + $0x5bc] ss:$36 sps:$4 sm:$0xff]  }
  0xc2   :  { %1797 = vmatpush1.bf16.msra.mxu0 %v4843_v1  ;;  %1883 = vmatpush1.bf16.msra.mxu1 %v4900_v2  ;;  %v4909_v1 = vld [vmem:[#allocation6 + $0x5b0] ss:$36 sps:$4 sm:$0xff]   ;;  %v4917_v2 = vld [vmem:[#allocation6 + $0x5fc] ss:$36 sps:$4 sm:$0xff]  }
  0xc3   :  { %1798 = vmatprep.subr.bf16.mxu0 %v4848_v3  ;;  %1884 = vmatprep.subr.bf16.mxu1 %v4908_v4  ;;  %v4960_v3 = vld [vmem:[#allocation6 + $0x5b8] ss:$36 sps:$4 sm:$0xff]   ;;  %v4965_v4 = vld [vmem:[#allocation6 + $0x604] ss:$36 sps:$4 sm:$0xff]  }
  0xc6   :  { %1799 = vmatpush1.bf16.msra.mxu0 %v4846_v5  ;;  %1885 = vmatpush1.bf16.msra.mxu1 %v4906_v6  ;;  %v4915_v5 = vld [vmem:[#allocation6 + $0x5f8] ss:$36 sps:$4 sm:$0xff]   ;;  %v4923_v6 = vld [vmem:[#allocation6 + $0x644] ss:$36 sps:$4 sm:$0xff]  }
  0xc7   :  { %1800 = vmatprep.subr.bf16.mxu0 %v4851_v7  ;;  %1886 = vmatprep.subr.bf16.mxu1 %v4914_v9  ;;  %v4963_v7 = vld [vmem:[#allocation6 + $0x600] ss:$36 sps:$4 sm:$0xff]   ;;  %v4968_v9 = vld [vmem:[#allocation6 + $0x64c] ss:$36 sps:$4 sm:$0xff]  }
  0xca   :  { %1801 = vmatpush1.bf16.msra.mxu0 %v4849_v10  ;;  %1887 = vmatpush1.bf16.msra.mxu1 %v4912_v11  ;;  %v4921_v10 = vld [vmem:[#allocation6 + $0x640] ss:$36 sps:$4 sm:$0xff]   ;;  %v4929_v11 = vld [vmem:[#allocation6 + $0x68c] ss:$36 sps:$4 sm:$0xff]  }
  0xcb   :  { %1802 = vmatprep.subr.bf16.mxu0 %v4854_v12  ;;  %1888 = vmatprep.subr.bf16.mxu1 %v4920_v13  ;;  %v4966_v12 = vld [vmem:[#allocation6 + $0x648] ss:$36 sps:$4 sm:$0xff]   ;;  %v4971_v13 = vld [vmem:[#allocation6 + $0x694] ss:$36 sps:$4 sm:$0xff]  }
  0xce   :  { %1803 = vmatpush1.bf16.msra.mxu0 %v4852_v14  ;;  %1889 = vmatpush1.bf16.msra.mxu1 %v4918_v15  ;;  %v4927_v14 = vld [vmem:[#allocation6 + $0x688] ss:$36 sps:$4 sm:$0xff]   ;;  %v4969_v15 = vld [vmem:[#allocation6 + $0x690] ss:$36 sps:$4 sm:$0xff]  }
  0xcf   :  { %1804 = vmatprep.subr.bf16.mxu0 %v4857_v17  ;;  %1890 = vmatprep.subr.bf16.mxu1 %v4926_v18  ;;  %v4972_v17 = vld [vmem:[#allocation6 + $0x260] ss:$36 sps:$4 sm:$0xff]  }
  0xd0   :  { %v4973_v18 = vld [vmem:[#allocation6 + $0x20] ss:$36 sps:$4 sm:$0xff]  }
  0xd2   :  { %1805 = vmatpush1.bf16.msra.mxu0 %v4855_v19  ;;  %1891 = vmatpush1.bf16.msra.mxu1 %v4924_v21  ;;  %v4974_v19 = vld [vmem:[#allocation6 + $0x4a0] ss:$36 sps:$4 sm:$0xff]   ;;  %v5269_v21 = vmov 0.0  }
  0xd3   :  { %1806 = vmatprep.subr.bf16.mxu0 %v4860_v20  ;;  %1892 = vmatprep.subr.bf16.mxu1 %v4932_v22  ;;  %v4975_v20 = vld [vmem:[#allocation6 + $0x2a8] ss:$36 sps:$4 sm:$0xff]  }
  0xd4   :  { %v4976_v22 = vld [vmem:[#allocation6 + $0x68] ss:$36 sps:$4 sm:$0xff]  }
  0xd6   :  { %1807 = vmatpush1.bf16.msra.mxu0 %v4858_v23  ;;  %1893 = vmatpush1.bf16.msra.mxu1 %v4930_v25  ;;  %v4977_v23 = vld [vmem:[#allocation6 + $0x4e8] ss:$36 sps:$4 sm:$0xff]   ;;  %v4979_v25 = vld [vmem:[#allocation6 + $0xb0] ss:$36 sps:$4 sm:$0xff]  }
  0xd7   :  { %1808 = vmatprep.subr.bf16.mxu0 %v4863_v24  ;;  %1894 = vmatprep.subr.bf16.mxu1 %v4935_v26  ;;  %v4978_v24 = vld [vmem:[#allocation6 + $0x2f0] ss:$36 sps:$4 sm:$0xff]  }
  0xd8   :  { %v4980_v26 = vld [vmem:[#allocation6 + $0x530] ss:$36 sps:$4 sm:$0xff]  }
  0xda   :  { %1809 = vmatpush1.bf16.msra.mxu0 %v4861_v27  ;;  %1895 = vmatpush1.bf16.msra.mxu1 %v4933_v29  ;;  %v4981_v27 = vld [vmem:[#allocation6 + $0x338] ss:$36 sps:$4 sm:$0xff]  }
  0xdb   :  { %1810 = vmatprep.subr.bf16.mxu0 %v4866_v28  ;;  %1896 = vmatprep.subr.bf16.mxu1 %v4938_v30  ;;  %v4982_v28 = vld [vmem:[#allocation6 + $0xf8] ss:$36 sps:$4 sm:$0xff]   ;;  %v4984_v30 = vld [vmem:[#allocation6 + $0x380] ss:$36 sps:$4 sm:$0xff]  }
  0xdc   :  { %v4983_v29 = vld [vmem:[#allocation6 + $0x578] ss:$36 sps:$4 sm:$0xff]  }
  0xde   :  { %1811 = vmatpush1.bf16.msra.mxu0 %v4864_v31  ;;  %1897 = vmatpush1.bf16.msra.mxu1 %v4936_v33  ;;  %v4986_v31 = vld [vmem:[#allocation6 + $0x5c0] ss:$36 sps:$4 sm:$0xff]   ;;  %v4988_v33 = vld [vmem:[#allocation6 + $0x188] ss:$36 sps:$4 sm:$0xff]  }
  0xdf   :  { %1812 = vmatprep.subr.bf16.mxu0 %v4869_v32  ;;  %1898 = vmatprep.subr.bf16.mxu1 %v4941_v34  ;;  %v4987_v32 = vld [vmem:[#allocation6 + $0x3c8] ss:$36 sps:$4 sm:$0xff]  }
  0xe0   :  { %v4989_v34 = vld [vmem:[#allocation6 + $0x608] ss:$36 sps:$4 sm:$0xff]  }
  0xe2   :  { %1813 = vmatpush1.bf16.msra.mxu0 %v4867_v35  ;;  %1899 = vmatpush1.bf16.msra.mxu1 %v4939_v37  ;;  %v4990_v35 = vld [vmem:[#allocation6 + $0x410] ss:$36 sps:$4 sm:$0xff]  }
  0xe3   :  { %1814 = vmatprep.subr.bf16.mxu0 %v4875_v36  ;;  %1900 = vmatprep.subr.bf16.mxu1 %v4944_v38  ;;  %v4991_v36 = vld [vmem:[#allocation6 + $0x1d0] ss:$36 sps:$4 sm:$0xff]   ;;  %v4993_v38 = vld [vmem:[#allocation6 + $0x458] ss:$36 sps:$4 sm:$0xff]  }
  0xe4   :  { %v4992_v37 = vld [vmem:[#allocation6 + $0x650] ss:$36 sps:$4 sm:$0xff]  }
  0xe6   :  { %1815 = vmatpush1.bf16.msra.mxu0 %v4873_v39  ;;  %1901 = vmatpush1.bf16.msra.mxu1 %v4942_v41  ;;  %v4994_v39 = vld [vmem:[#allocation6 + $0x218] ss:$36 sps:$4 sm:$0xff]   ;;  %v429_v41 = vlaneseq }
  0xe7   :  { %1816 = vmatprep.subr.bf16.mxu0 %v4881_v40  ;;  %1902 = vmatprep.subr.bf16.mxu1 %v4947_v42  ;;  %v4995_v40 = vld [vmem:[#allocation6 + $0x698] ss:$36 sps:$4 sm:$0xff]  }
  0xe8   :  { %v5403_v42 = vshrl.u32 %v429_v41, 7 }
  0xea   :  { %1817 = vmatpush1.bf16.msra.mxu0 %v4879_v44  ;;  %1903 = vmatpush1.bf16.msra.mxu1 %v4945_v45  ;;  %v324_v44 = vld [vmem:[#allocation8] sm:$0xff] }
  0xeb   :  { %1829 = vmatprep.subr.bf16.mxu0 %v4887_v46  ;;  %1915 = vmatprep.subr.bf16.mxu1 %v4950_v47  ;;  %v423_v45 = vunpack.c.l.bf16 %v324_v44  ;;  %v5406_v46 = vsub.s32 4, %v5403_v42  ;;  %v5409_v47 = vsub.s32 0, %v5403_v42 }
  0xed   :  { %1819 = vmatmul.mubr.bf16.vlgmr.msra.gmra.mrb[4].mxu0 %v5365_v8  ;;  %1905 = vmatmul.mubr.bf16.vlgmr.msra.gmra.mrb[4].mxu1 %v5365_v8 }
  0xee   :  { %1830 = vmatpush1.bf16.msra.mxu0 %v4885_v48  ;;  %1861 = vmatprep.mubr.bf16.mxu0 %v5268_v16  ;;  %v440_v48 = vrot.slane %v423_v45, %v5406_v46 }
  0xef   :  { %1831 = vmatprep.subr.bf16.mxu0 %v4893_v49  ;;  %1916 = vmatpush1.bf16.msra.mxu1 %v4948_v51  ;;  %v432_v49 = vrot.slane %v423_v45, %v5409_v47 }
  0xf0   :  { %1917 = vmatprep.subr.bf16.mxu1 %v4953_v52  ;;  %1947 = vmatprep.mubr.bf16.mxu1 %v5268_v16 }
  0xf2   :  { %1832 = vmatpush1.bf16.msra.mxu0 %v4891_v53  ;;  %v485_v53 = vrot.slane %v440_v48, %v5409_v47 }
  0xf3   :  { %1833 = vmatprep.subr.bf16.mxu0 %v4899_v54  ;;  %1918 = vmatpush1.bf16.msra.mxu1 %v4951_v55  ;;  %v477_v54 = vrot.slane %v432_v49, %v5409_v47 }
  0xf4   :  { %1919 = vmatprep.subr.bf16.mxu1 %v4956_v56 }
  0xf6   :  { %1834 = vmatpush1.bf16.msra.mxu0 %v4897_v57 }
  0xf7   :  { %1835 = vmatprep.subr.bf16.mxu0 %v4905_v58  ;;  %1920 = vmatpush1.bf16.msra.mxu1 %v4954_v59 }
  0xf8   :  { %1921 = vmatprep.subr.bf16.mxu1 %v4959_v60 }
  0xfa   :  { %1836 = vmatpush1.bf16.msra.mxu0 %v4903_v61 }
  0xfb   :  { %1837 = vmatprep.subr.bf16.mxu0 %v4911_v62  ;;  %1922 = vmatpush1.bf16.msra.mxu1 %v4957_v63 }
  0xfc   :  { %1923 = vmatprep.subr.bf16.mxu1 %v4962_v0 }
  0xfe   :  { %1838 = vmatpush1.bf16.msra.mxu0 %v4909_v1 }
  0xff   :  { %1839 = vmatprep.subr.bf16.mxu0 %v4917_v2  ;;  %1924 = vmatpush1.bf16.msra.mxu1 %v4960_v3 }
 0x100   :  { %1925 = vmatprep.subr.bf16.mxu1 %v4965_v4 }
 0x102   :  { %1840 = vmatpush1.bf16.msra.mxu0 %v4915_v5 }
 0x103   :  { %1841 = vmatprep.subr.bf16.mxu0 %v4923_v6  ;;  %1926 = vmatpush1.bf16.msra.mxu1 %v4963_v7 }
 0x104   :  { %1927 = vmatprep.subr.bf16.mxu1 %v4968_v9 }
 0x106   :  { %1842 = vmatpush1.bf16.msra.mxu0 %v4921_v10 }
 0x107   :  { %1843 = vmatprep.subr.bf16.mxu0 %v4929_v11  ;;  %1928 = vmatpush1.bf16.msra.mxu1 %v4966_v12 }
 0x108   :  { %1929 = vmatprep.subr.bf16.mxu1 %v4971_v13 }
 0x10a   :  { %1844 = vmatpush1.bf16.msra.mxu0 %v4927_v14 }
 0x10b   :  { %1930 = vmatpush1.bf16.msra.mxu1 %v4969_v15  ;;  %4335 = vmatprep.subr.bf16.mxu0 %v4972_v17  ;;  %v424_v15 = vunpack.c.h.bf16 %v324_v44 }
 0x10c   :  { %4445 = vmatprep.subr.bf16.mxu1 %v5269_v21 }
 0x10d   :  { %1862 = vmatmul.mubr.bf16.vlgmr.msra.gmra.mrb[4].mxu0 %v5371_v43  ;;  %v448_v17 = vrot.slane %v424_v15, %v5409_v47 }
 0x10e   :  { %1948 = vmatmul.mubr.bf16.vlgmr.msra.gmra.mrb[4].mxu1 %v5371_v43  ;;  %4336 = vmatpush3.bf16.msra.mxu0 %v4973_v18 }
 0x10f   :  { %4446 = vmatpush3.bf16.msra.mxu1 %v4974_v19  ;;  %4337 = vmatprep.subr.bf16.mxu0 %v4975_v20  ;;  %v456_v19 = vrot.slane %v424_v15, %v5406_v46 }
 0x110   :  { %4447 = vmatprep.subr.bf16.mxu1 %v5269_v21  ;;  %1990 = vmatprep.mubr.bf16.mxu0 %v5361_v50  ;;  %v4985_v50 = vld [vmem:[#allocation6 + $0x140] ss:$36 sps:$4 sm:$0xff]  }
 0x111   :  { %4461 = vmatprep.mubr.msk.bf16.mxu1 %vm5270_vm0, %v5269_v21 }
 0x112   :  { %4338 = vmatpush3.bf16.msra.mxu0 %v4976_v22  ;;  %v493_v22 = vrot.slane %v448_v17, %v5409_v47 }
 0x113   :  { %4448 = vmatpush3.bf16.msra.mxu1 %v4977_v23  ;;  %4339 = vmatprep.subr.bf16.mxu0 %v4978_v24  ;;  %v501_v24 = vrot.slane %v456_v19, %v5409_v47 }
 0x114   :  { %4449 = vmatprep.subr.bf16.mxu1 %v5269_v21 }
 0x116   :  { %4340 = vmatpush3.bf16.msra.mxu0 %v4979_v25 }
 0x117   :  { %4450 = vmatpush3.bf16.msra.mxu1 %v4980_v26  ;;  %4341 = vmatprep.subr.bf16.mxu0 %v4981_v27 }
 0x118   :  { %4451 = vmatprep.subr.bf16.mxu1 %v5269_v21 }
 0x11a   :  { %4342 = vmatpush3.bf16.msra.mxu0 %v4982_v28 }
 0x11b   :  { %4452 = vmatpush3.bf16.msra.mxu1 %v4983_v29  ;;  %4343 = vmatprep.subr.bf16.mxu0 %v4984_v30 }
 0x11c   :  { %4453 = vmatprep.subr.bf16.mxu1 %v5269_v21 }
 0x11e   :  { %4344 = vmatpush3.bf16.msra.mxu0 %v4985_v50 }
 0x11f   :  { %4454 = vmatpush3.bf16.msra.mxu1 %v4986_v31  ;;  %4345 = vmatprep.subr.bf16.mxu0 %v4987_v32 }
 0x120   :  { %4455 = vmatprep.subr.bf16.mxu1 %v5269_v21 }
 0x122   :  { %4346 = vmatpush3.bf16.msra.mxu0 %v4988_v33 }
 0x123   :  { %4456 = vmatpush3.bf16.msra.mxu1 %v4989_v34  ;;  %4347 = vmatprep.subr.bf16.mxu0 %v4990_v35 }
 0x124   :  { %4457 = vmatprep.subr.bf16.mxu1 %v5269_v21 }
 0x126   :  { %4348 = vmatpush3.bf16.msra.mxu0 %v4991_v36 }
 0x127   :  { %4458 = vmatpush3.bf16.msra.mxu1 %v4992_v37  ;;  %4349 = vmatprep.subr.bf16.mxu0 %v4993_v38 }
 0x128   :  { %4459 = vmatprep.subr.bf16.mxu1 %v5269_v21 }
 0x12a   :  { %4350 = vmatpush3.bf16.msra.mxu0 %v4994_v39 }
 0x12b   :  { %4460 = vmatpush3.bf16.msra.mxu1 %v4995_v40  ;;  %4489 = vmatprep.subr.bf16.mxu0 %v5269_v21 }
 0x12c   :  { %4465 = vmatprep.subr.bf16.mxu1 %v5269_v21 }
 0x12d   :  { %1991 = vmatmul.mubr.bf16.vlgmr.msra.gmra.mrb[8].mxu0 %v5365_v8  ;;  %v5412_v8 = vsub.s32 2, %v5403_v42 }
 0x12e   :  { %4462 = vmatmul.mubr.bf16.vlgmr.msra.gmra.mrb[8].mxu1 %v5371_v43  ;;  %4491 = vmatprep.mubr.msk.bf16.mxu0 %vm5270_vm0, %v5269_v21  ;;  %v443_v43 = vsub.s32 6, %v5403_v42 }
 0x12f   :  { %4467 = vmatprep.mubr.msk.bf16.mxu1 %vm5270_vm0, %v5269_v21  ;;  %v436_v51 = vrot.slane %v423_v45, %v5412_v8  ;;  %v452_v18 = vrot.slane %v424_v15, %v5412_v8 }
 0x130   :  { %v444_v52 = vrot.slane %v423_v45, %v443_v43  ;;  %v460_v20 = vrot.slane %v424_v15, %v443_v43 }
 0x131   :  { %v481_v57 = vrot.slane %v436_v51, %v5409_v47  ;;  %v497_v23 = vrot.slane %v452_v18, %v5409_v47 }
 0x132   :  { %v489_v58 = vrot.slane %v444_v52, %v5409_v47  ;;  %v505_v25 = vrot.slane %v460_v20, %v5409_v47 }
 0x180   :  { %v1691_v55 = vpop.f32.mrb[0].mxu0  ;;  %v1777_v56 = vpop.f32.mrb[0].mxu1 }
 0x181   :  { %v4633_v59 = vadd.f32 %v1777_v56, %v485_v53  ;;  %v1693_v60 = vpop.f32.mrb[1].mxu0  ;;  %v1779_v61 = vpop.f32.mrb[1].mxu1  ;;  %v4629_v0 = vadd.f32 %v1691_v55, %v477_v54 }
 0x182   :  { %v1695_v62 = vpop.f32.mrb[2].mxu0  ;;  %v1781_v63 = vpop.f32.mrb[2].mxu1  ;;  %v4630_v5 = vadd.f32 %v1693_v60, %v481_v57  ;;  %v4634_v6 = vadd.f32 %v1779_v61, %v489_v58 }
 0x183   :  { %v4631_v1 = vadd.f32 %v1695_v62, %v477_v54  ;;  %v4635_v2 = vadd.f32 %v1781_v63, %v485_v53  ;;  %v1697_v3 = vpop.f32.mrb[3].mxu0  ;;  %v1783_v4 = vpop.f32.mrb[3].mxu1  ;;  %v325_v54 = vld [vmem:[#allocation8 + $0x8] sm:$0x1] }
 0x184   :  { %v4632_v7 = vadd.f32 %v1697_v3, %v481_v57  ;;  %v4636_v9 = vadd.f32 %v1783_v4, %v489_v58  ;;  %v425_v55 = vunpack.c.l.bf16 %v325_v54 }
 0x185   :  { %v5422_v10 = vpack.c.bf16 %v4631_v1, %v4629_v0  ;;  %v5424_v11 = vpack.c.bf16 %v4635_v2, %v4633_v59 }
 0x186   :  { %v5426_v12 = vpack.c.bf16 %v4632_v7, %v4630_v5  ;;  %v5428_v13 = vpack.c.bf16 %v4636_v9, %v4634_v6  ;;  %v464_v56 = vrot.slane %v425_v55, %v5409_v47 }
 0x187   :  { %v2733_v53 = vrot.slane %v5422_v10, 4 }
 0x188   :  { %2167 = vrot.lane.b32.xlu1 %v5428_v13, %s5271_s3  ;;  %v2059_v14 = vsel %vm2054_vm1, %v5428_v13, 0  ;;  %v2734_v52 = vrot.slane %v5428_v13, 4  ;;  %v509_v58 = vrot.slane %v464_v56, %v5409_v47 }
 0x189   :  { %4466 = vmatpush3.bf16.xpose.msra.mxu1 %v2059_v14  ;;  %v2052_v14 = vand.u32 127, %v429_v41 }
 0x18a   :  { %4471 = vmatprep.subr.bf16.mxu1 %v5269_v21 }
 0x18b   :  { %vm5486_vm3 = vcmp.ge.s32.totalorder %v5403_v42, %v2052_v14 }
 0x18c   :  { %2164 = vrot.lane.b32.xlu1 %v5422_v10, %s5271_s3 }
 0x190   :  { %2390 = vrot.lane.b32.xlu1 %v5426_v12, %s5271_s3  ;;  %4468 = vmatmul.mubr.msk.bf16.vlgmr.msra.gmra.mrb[12].mxu1 %vm2054_vm1, %v5422_v10 }
 0x191   :  { %4473 = vmatprep.mubr.msk.bf16.mxu1 %vm5270_vm0, %v5269_v21 }
 0x1e0   :  { %v1863_v26 = vpop.f32.mrb[4].mxu0 }
 0x1e1   :  { %v4637_v27 = vadd.f32 %v1863_v26, %v493_v22  ;;  %v1865_v28 = vpop.f32.mrb[5].mxu0  ;;  %v1949_v29 = vpop.f32.mrb[4].mxu1 }
 0x1e2   :  { %v4638_v30 = vadd.f32 %v1865_v28, %v497_v23  ;;  %v1867_v50 = vpop.f32.mrb[6].mxu0  ;;  %v4641_v31 = vadd.f32 %v1949_v29, %v501_v24  ;;  %v1951_v32 = vpop.f32.mrb[5].mxu1 }
 0x1e3   :  { %v4639_v33 = vadd.f32 %v1867_v50, %v493_v22  ;;  %v1869_v34 = vpop.f32.mrb[7].mxu0  ;;  %v4642_v35 = vadd.f32 %v1951_v32, %v505_v25  ;;  %v1953_v36 = vpop.f32.mrb[6].mxu1  ;;  %v2958_v32 = vrot.slane %v5426_v12, 4 }
 0x1e4   :  { %v4640_v37 = vadd.f32 %v1869_v34, %v497_v23  ;;  %v4643_v38 = vadd.f32 %v1953_v36, %v501_v24  ;;  %v1955_v39 = vpop.f32.mrb[7].mxu1 }
 0x1e5   :  { %v5450_v40 = vpack.c.bf16 %v4639_v33, %v4637_v27  ;;  %v4644_v44 = vadd.f32 %v1955_v39, %v505_v25  ;;  %v3183_v33 = vrot.slane %v5424_v11, 4 }
 0x1e6   :  { %v5452_v45 = vpack.c.bf16 %v4640_v37, %v4638_v30  ;;  %v5454_v43 = vpack.c.bf16 %v4643_v38, %v4641_v31 }
 0x1e7   :  { %v2287_v48 = vsel %vm2054_vm1, %v5450_v40, 0  ;;  %v5458_v49 = vpack.c.bf16 %v4644_v44, %v4642_v35  ;;  %v2959_v24 = vrot.slane %v5450_v40, 4 }
 0x1e8   :  { %4490 = vmatpush3.bf16.xpose.msra.mxu0 %v2287_v48  ;;  %2618 = vrot.lane.b32.xlu1 %v5452_v45, %s5271_s3  ;;  %v2120_v51 = vsel %vm2118_vm2, %v5454_v43, 0  ;;  %v3184_v41 = vrot.slane %v5452_v45, 4  ;;  %v2512_v54 = vsel %vm2054_vm1, %v5452_v45, 0 }
 0x1e9   :  { %4472 = vmatpush3.bf16.msra.mxu1 %v2120_v51  ;;  %4501 = vmatprep.subr.bf16.mxu0 %v5269_v21 }
 0x1ea   :  { %4477 = vmatprep.subr.bf16.mxu1 %v5269_v21 }
 0x1ec   :  { %2615 = vrot.lane.b32.xlu1 %v5424_v11, %s5271_s3 }
 0x1ef   :  { %4492 = vmatmul.mubr.msk.bf16.vlgmr.msra.gmra.mrb[12].mxu0 %vm2054_vm1, %v5426_v12 }
 0x1f0   :  { %2844 = vrot.lane.b32.xlu1 %v2734_v52, %s5271_s3  ;;  %4503 = vmatprep.mubr.msk.bf16.mxu0 %vm5270_vm0, %v5269_v21 }
 0x1f4   :  { %2842 = vrot.lane.b32.xlu1 %v2733_v53, %s5271_s3 }
 0x1f8   :  { %3069 = vrot.lane.b32.xlu1 %v2959_v24, %s5271_s3 }
 0x1fa   :  { %v2168_v36 = vpop.permute.xlu1 %2167 }
 0x1fb   :  { %v2173_v56 = vsel %vm2054_vm1, %v2168_v36, 0 }
 0x1fc   :  { %3294 = vrot.lane.b32.xlu1 %v3184_v41, %s5271_s3 }
 0x1fe   :  { %v2165_v39 = vpop.permute.xlu1 %2164 }
 0x200   :  { %v4351_v57 = vpop.f32.mrb[8].mxu0 }
 0x201   :  { %v4352_v59 = vpop.f32.mrb[9].mxu0  ;;  %v2033_v60 = vpop.f32.mrb[8].mxu1 }
 0x202   :  { %v4353_v61 = vadd.f32 %v4352_v59, %v4351_v57  ;;  %v4354_v62 = vpop.f32.mrb[10].mxu0  ;;  %v4463_v0 = vpop.f32.mrb[9].mxu1 }
 0x203   :  { %v4355_v63 = vpop.f32.mrb[11].mxu0  ;;  %v2036_v3 = vpop.f32.mrb[10].mxu1 }
 0x204   :  { %v4356_v1 = vadd.f32 %v4355_v63, %v4354_v62  ;;  %v1993_v2 = vadd.f32 %v4353_v61, %v509_v58  ;;  %v4464_v4 = vpop.f32.mrb[11].mxu1  ;;  %v2391_v48 = vpop.permute.xlu1 %2390  ;;  %v3189_v63 = vsel %vm2054_vm1, %v3184_v41, 0 }
 0x206   :  { %v2034_v5 = vadd.f32 %v2033_v60, %v1993_v2  ;;  %v1996_v6 = vadd.f32 %v4356_v1, %v509_v58  ;;  %v2739_v60 = vsel %vm2054_vm1, %v2734_v52, 0  ;;  %v2964_v52 = vsel %vm2054_vm1, %v2959_v24, 0 }
 0x208   :  { %v2037_v7 = vadd.f32 %v2036_v3, %v1996_v6 }
 0x20a   :  { %v5482_v9 = vpack.c.bf16 %v2037_v7, %v2034_v5 }
 0x25a   :  { %v2619_v57 = vpop.permute.xlu1 %2618 }
 0x25b   :  { %v2624_v58 = vsel %vm2054_vm1, %v2619_v57, 0 }
 0x25e   :  { %v2616_v59 = vpop.permute.xlu1 %2615 }
 0x262   :  { %v2845_v61 = vpop.permute.xlu1 %2844 }
 0x263   :  { %v2095_v17 = vpop.f32.mrb[12].mxu1  ;;  %v2850_v62 = vsel %vm2054_vm1, %v2845_v61, 0 }
 0x264   :  { %v2101_v18 = vsel %vm5486_vm3, %v2095_v17, -1e+30  ;;  %v4469_v19 = vpop.f32.mrb[13].mxu1 }
 0x265   :  { %v2098_v20 = vpop.f32.mrb[14].mxu1  ;;  %v2103_v22 = vsel %vm2102_vm4, %v2101_v18, -inf }
 0x266   :  { %2104 = vmax.xlane.f32.xlu0 %v2103_v22  ;;  %v4470_v23 = vpop.f32.mrb[15].mxu1  ;;  %v2843_v13 = vpop.permute.xlu1 %2842 }
 0x26a   :  { %v3070_v10 = vpop.permute.xlu1 %3069 }
 0x26e   :  { %v3295_v0 = vpop.permute.xlu1 %3294 }
 0x26f   :  { %v3300_v1 = vsel %vm2054_vm1, %v3295_v0, 0 }
 0x2c2   :  { %v2323_v42 = vpop.f32.mrb[12].mxu0 }
 0x2c3   :  { %v4493_v25 = vpop.f32.mrb[13].mxu0  ;;  %v5512_v34 = vsel %vm5486_vm3, %v2323_v42, -1e+30 }
 0x2c4   :  { %v2326_v26 = vpop.f32.mrb[14].mxu0  ;;  %v2330_v35 = vsel %vm2102_vm4, %v5512_v34, -inf }
 0x2c5   :  { %v4494_v27 = vpop.f32.mrb[15].mxu0 }
 0x2f3   :  { %v2105_v28 = vpop.xlane.xlu0 %2104 }
 0x2f4   :  { %v2106_v29 = vsub.f32 %v2101_v18, %v2105_v28 }
 0x2f6   :  { %v2107_v30 = vmul.f32 1.442695, %v2106_v29 }
 0x2f8   :  { %5092 = vpow2.f32 %v2107_v30 }
 0x302   :  { %v5093_v50 = vpop.eup %5092 }
 0x303   :  { %v2109_v31 = vsel %vm2102_vm4, %v5093_v50, 0.0 }
 0x304   :  { %2110 = vadd.xlane.f32.xlu0 %v2109_v31 }
 0x31a   :  { %2393 = vrot.lane.b32.xlu0 %v5450_v40, %s5271_s3 }
 0x31e   :  { %3067 = vrot.lane.b32.xlu0 %v2958_v32, %s5271_s3 }
 0x322   :  { %3292 = vrot.lane.b32.xlu0 %v3183_v33, %s5271_s3 }
 0x341   :  { %2331 = vmax.xlane.f32.xlu0 %v2330_v35 }
 0x391   :  { %v2111_v37 = vpop.xlane.xlu0 %2110 }
 0x392   :  { %5094 = vrcp.f32 %v2111_v37 }
 0x395   :  { %v2394_v12 = vpop.permute.xlu0 %2393 }
 0x396   :  { %v2399_v38 = vsel %vm2054_vm1, %v2394_v12, 0 }
 0x397   :  { %4502 = vmatpush3.bf16.xpose.msra.mxu0 %v2399_v38 }
 0x398   :  { %4513 = vmatprep.subr.bf16.mxu0 %v5269_v21 }
 0x399   :  { %v3068_v40 = vpop.permute.xlu0 %3067 }
 0x39c   :  { %v5095_v44 = vpop.eup %5094 }
 0x39d   :  { %v2113_v51 = vmul.f32 %v5095_v44, %v5093_v50  ;;  %v3293_v45 = vpop.permute.xlu0 %3292 }
 0x39e   :  { %4504 = vmatmul.mubr.msk.bf16.vlgmr.msra.gmra.mrb[16].mxu0 %vm2054_vm1, %v2391_v48 }
 0x39f   :  { %4514 = vmatpush3.bf16.xpose.msra.mxu0 %v2512_v54  ;;  %v2114_v55 = vpack.c.bf16 %v2113_v51, %v2113_v51  ;;  %4515 = vmatprep.mubr.msk.bf16.mxu0 %vm5270_vm0, %v5269_v21 }
 0x3a0   :  { %4525 = vmatprep.subr.bf16.mxu0 %v5269_v21 }
 0x3a1   :  { %4474 = vmatmul.mubr.msk.bf16.vlgmr.msra.gmra.mrb[16].mxu1 %vm2102_vm4, %v2114_v55 }
 0x3a2   :  { %4478 = vmatpush3.bf16.xpose.msra.mxu1 %v2173_v56  ;;  %4479 = vmatprep.mubr.msk.bf16.mxu1 %vm5270_vm0, %v5269_v21 }
 0x3a3   :  { %4483 = vmatprep.subr.bf16.mxu1 %v5269_v21 }
 0x3a6   :  { %4516 = vmatmul.mubr.msk.bf16.vlgmr.msra.gmra.mrb[20].mxu0 %vm2054_vm1, %v5424_v11 }
 0x3a7   :  { %4526 = vmatpush3.bf16.xpose.msra.mxu0 %v2624_v58  ;;  %4527 = vmatprep.mubr.msk.bf16.mxu0 %vm5270_vm0, %v5269_v21 }
 0x3a8   :  { %4537 = vmatprep.subr.bf16.mxu0 %v5269_v21 }
 0x3a9   :  { %4480 = vmatmul.mubr.msk.bf16.vlgmr.msra.gmra.mrb[20].mxu1 %vm2054_vm1, %v2165_v39 }
 0x3aa   :  { %4485 = vmatprep.mubr.msk.bf16.mxu1 %vm5270_vm0, %v5269_v21 }
 0x3ae   :  { %4528 = vmatmul.mubr.msk.bf16.vlgmr.msra.gmra.mrb[24].mxu0 %vm2054_vm1, %v2616_v59 }
 0x3af   :  { %4538 = vmatpush3.bf16.xpose.msra.mxu0 %v2739_v60  ;;  %4539 = vmatprep.mubr.msk.bf16.mxu0 %vm5270_vm0, %v5269_v21 }
 0x3b0   :  { %4549 = vmatprep.subr.bf16.mxu0 %v5269_v21 }
 0x3b6   :  { %4540 = vmatmul.mubr.msk.bf16.vlgmr.msra.gmra.mrb[28].mxu0 %vm2054_vm1, %v2733_v53  ;;  %v3075_v53 = vsel %vm2054_vm1, %v3070_v10, 0 }
 0x3b7   :  { %4550 = vmatpush3.bf16.xpose.msra.mxu0 %v2850_v62  ;;  %4551 = vmatprep.mubr.msk.bf16.mxu0 %vm5270_vm0, %v5269_v21 }
 0x3b8   :  { %4561 = vmatprep.subr.bf16.mxu0 %v5269_v21 }
 0x3be   :  { %4552 = vmatmul.mubr.msk.bf16.vlgmr.msra.gmra.mrb[32].mxu0 %vm2054_vm1, %v2843_v13 }
 0x3bf   :  { %4562 = vmatpush3.bf16.xpose.msra.mxu0 %v2964_v52  ;;  %4563 = vmatprep.mubr.msk.bf16.mxu0 %vm5270_vm0, %v5269_v21 }
 0x3c0   :  { %4573 = vmatprep.subr.bf16.mxu0 %v5269_v21 }
 0x3c6   :  { %4564 = vmatmul.mubr.msk.bf16.vlgmr.msra.gmra.mrb[36].mxu0 %vm2054_vm1, %v2958_v32 }
 0x3c7   :  { %4574 = vmatpush3.bf16.xpose.msra.mxu0 %v3075_v53  ;;  %4575 = vmatprep.mubr.msk.bf16.mxu0 %vm5270_vm0, %v5269_v21 }
 0x3c8   :  { %4585 = vmatprep.subr.bf16.mxu0 %v5269_v21 }
 0x3ce   :  { %4576 = vmatmul.mubr.msk.bf16.vlgmr.msra.gmra.mrb[40].mxu0 %vm2054_vm1, %v3068_v40  ;;  %v2332_v36 = vpop.xlane.xlu0 %2331 }
 0x3cf   :  { %4586 = vmatpush3.bf16.xpose.msra.mxu0 %v3189_v63  ;;  %4587 = vmatprep.mubr.msk.bf16.mxu0 %vm5270_vm0, %v5269_v21  ;;  %v2333_v12 = vsub.f32 %v5512_v34, %v2332_v36 }
 0x3d0   :  { %4597 = vmatprep.subr.bf16.mxu0 %v5269_v21 }
 0x3d1   :  { %v2334_v54 = vmul.f32 1.442695, %v2333_v12 }
 0x3d3   :  { %5096 = vpow2.f32 %v2334_v54 }
 0x3d6   :  { %4588 = vmatmul.mubr.msk.bf16.vlgmr.msra.gmra.mrb[44].mxu0 %vm2054_vm1, %v3183_v33 }
 0x3d7   :  { %4598 = vmatpush3.bf16.xpose.msra.mxu0 %v3300_v1  ;;  %4599 = vmatprep.mubr.msk.bf16.mxu0 %vm5270_vm0, %v5269_v21 }
 0x3dd   :  { %v5622_v10 = vpop.eup %5096 }
 0x3de   :  { %4600 = vmatmul.mubr.msk.bf16.vlgmr.msra.gmra.mrb[48].mxu0 %vm2054_vm1, %v3293_v45  ;;  %v2336_v40 = vsel %vm2102_vm4, %v5622_v10, 0.0 }
 0x471   :  { %v2435_v2 = vpop.f32.mrb[16].mxu0 }
 0x472   :  { %v5580_v3 = vsel %vm5486_vm3, %v2435_v2, -1e+30  ;;  %v4505_v4 = vpop.f32.mrb[17].mxu0 }
 0x473   :  { %v2438_v5 = vpop.f32.mrb[18].mxu0  ;;  %v2442_v6 = vsel %vm2102_vm4, %v5580_v3, -inf }
 0x474   :  { %2443 = vmax.xlane.f32.xlu0 %v2442_v6  ;;  %v2156_v11 = vpop.f32.mrb[16].mxu1  ;;  %v4506_v7 = vpop.f32.mrb[19].mxu0 }
 0x475   :  { %2162 = vst.msk [vmem:[#allocation2] sm:$0xff] %vm2054_vm1, %v2156_v11  ;;  %v4475_v14 = vpop.f32.mrb[17].mxu1 }
 0x476   :  { %v2159_v17 = vpop.f32.mrb[18].mxu1 }
 0x477   :  { %v4476_v18 = vpop.f32.mrb[19].mxu1 }
 0x479   :  { %v2548_v19 = vpop.f32.mrb[20].mxu0 }
 0x47a   :  { %v4517_v20 = vpop.f32.mrb[21].mxu0  ;;  %v5593_v27 = vsel %vm5486_vm3, %v2548_v19, -1e+30 }
 0x47b   :  { %v2551_v22 = vpop.f32.mrb[22].mxu0  ;;  %v2555_v31 = vsel %vm2102_vm4, %v5593_v27, -inf }
 0x47c   :  { %v2209_v23 = vpop.f32.mrb[20].mxu1  ;;  %v4518_v24 = vpop.f32.mrb[23].mxu0 }
 0x47d   :  { %v5587_v41 = vsel %vm5486_vm3, %v2209_v23, -1e+30  ;;  %v4481_v42 = vpop.f32.mrb[21].mxu1 }
 0x47e   :  { %v2212_v25 = vpop.f32.mrb[22].mxu1  ;;  %v2216_v26 = vsel %vm2102_vm4, %v5587_v41, -inf }
 0x47f   :  { %2217 = vmax.xlane.f32.xlu1 %v2216_v26  ;;  %v4482_v28 = vpop.f32.mrb[23].mxu1 }
 0x481   :  { %v2660_v29 = vpop.f32.mrb[24].mxu0 }
 0x482   :  { %v5597_v30 = vsel %vm5486_vm3, %v2660_v29, -1e+30  ;;  %v4529_v50 = vpop.f32.mrb[25].mxu0 }
 0x483   :  { %v2663_v32 = vpop.f32.mrb[26].mxu0  ;;  %2556 = vmax.xlane.f32.xlu1 %v2555_v31  ;;  %v2667_v33 = vsel %vm2102_vm4, %v5597_v30, -inf }
 0x484   :  { %2668 = vmax.xlane.f32.xlu0 %v2667_v33  ;;  %v4530_v35 = vpop.f32.mrb[27].mxu0 }
 0x489   :  { %v2775_v37 = vpop.f32.mrb[28].mxu0 }
 0x48a   :  { %v5606_v38 = vsel %vm5486_vm3, %v2775_v37, -1e+30  ;;  %v4541_v39 = vpop.f32.mrb[29].mxu0 }
 0x48b   :  { %v2778_v44 = vpop.f32.mrb[30].mxu0  ;;  %v2782_v48 = vsel %vm2102_vm4, %v5606_v38, -inf }
 0x48c   :  { %v4542_v51 = vpop.f32.mrb[31].mxu0  ;;  %2783 = vmax.xlane.f32.xlu1 %v2782_v48 }
 0x491   :  { %v2886_v55 = vpop.f32.mrb[32].mxu0 }
 0x492   :  { %v5612_v56 = vsel %vm5486_vm3, %v2886_v55, -1e+30  ;;  %v4553_v57 = vpop.f32.mrb[33].mxu0 }
 0x493   :  { %v2889_v34 = vpop.f32.mrb[34].mxu0  ;;  %v2893_v58 = vsel %vm2102_vm4, %v5612_v56, -inf }
 0x494   :  { %2894 = vmax.xlane.f32.xlu0 %v2893_v58  ;;  %v4554_v59 = vpop.f32.mrb[35].mxu0 }
 0x499   :  { %v3000_v60 = vpop.f32.mrb[36].mxu0 }
 0x49a   :  { %v5618_v61 = vsel %vm5486_vm3, %v3000_v60, -1e+30  ;;  %v4565_v62 = vpop.f32.mrb[37].mxu0 }
 0x49b   :  { %v3003_v13 = vpop.f32.mrb[38].mxu0  ;;  %v3007_v52 = vsel %vm2102_vm4, %v5618_v61, -inf }
 0x49c   :  { %v4566_v53 = vpop.f32.mrb[39].mxu0  ;;  %3008 = vmax.xlane.f32.xlu1 %v3007_v52 }
 0x4a0   :  { %2337 = vadd.xlane.f32.xlu1 %v2336_v40 }
 0x4a1   :  { %v3111_v63 = vpop.f32.mrb[40].mxu0 }
 0x4a2   :  { %v5628_v0 = vsel %vm5486_vm3, %v3111_v63, -1e+30  ;;  %v4577_v1 = vpop.f32.mrb[41].mxu0 }
 0x4a3   :  { %v3114_v45 = vpop.f32.mrb[42].mxu0  ;;  %v3118_v2 = vsel %vm2102_vm4, %v5628_v0, -inf }
 0x4a4   :  { %3119 = vmax.xlane.f32.xlu0 %v3118_v2  ;;  %v4578_v4 = vpop.f32.mrb[43].mxu0 }
 0x4a9   :  { %v3225_v5 = vpop.f32.mrb[44].mxu0 }
 0x4aa   :  { %v5634_v6 = vsel %vm5486_vm3, %v3225_v5, -1e+30  ;;  %v4589_v11 = vpop.f32.mrb[45].mxu0  ;;  %v2794_v5 = vrot.slane %v5454_v43, 4 }
 0x4ab   :  { %v3228_v7 = vpop.f32.mrb[46].mxu0  ;;  %v3232_v14 = vsel %vm2102_vm4, %v5634_v6, -inf  ;;  %v3019_v11 = vrot.slane %v5458_v49, 4 }
 0x4ac   :  { %3233 = vmax.xlane.f32.xlu0 %v3232_v14  ;;  %v4590_v17 = vpop.f32.mrb[47].mxu0 }
 0x4b1   :  { %v3336_v18 = vpop.f32.mrb[48].mxu0 }
 0x4b2   :  { %v5640_v19 = vsel %vm5486_vm3, %v3336_v18, -1e+30  ;;  %v4601_v20 = vpop.f32.mrb[49].mxu0 }
 0x4b3   :  { %v3339_v22 = vpop.f32.mrb[50].mxu0  ;;  %v3343_v23 = vsel %vm2102_vm4, %v5640_v19, -inf  ;;  %v3244_v20 = vrot.slane %v5482_v9, 4 }
 0x4b4   :  { %3344 = vmax.xlane.f32.xlu0 %v3343_v23  ;;  %v4602_v24 = vpop.f32.mrb[51].mxu0 }
 0x501   :  { %v2444_v42 = vpop.xlane.xlu0 %2443 }
 0x502   :  { %v2445_v25 = vsub.f32 %v5580_v3, %v2444_v42 }
 0x504   :  { %v2446_v26 = vmul.f32 1.442695, %v2445_v25 }
 0x506   :  { %5098 = vpow2.f32 %v2446_v26 }
 0x50c   :  { %v2218_v28 = vpop.xlane.xlu1 %2217 }
 0x50d   :  { %v2219_v29 = vsub.f32 %v5587_v41, %v2218_v28 }
 0x50f   :  { %v2220_v50 = vmul.f32 1.442695, %v2219_v29 }
 0x510   :  { %v5646_v31 = vpop.eup %5098  ;;  %v2557_v15 = vpop.xlane.xlu1 %2556 }
 0x511   :  { %5100 = vpow2.f32 %v2220_v50  ;;  %v2558_v32 = vsub.f32 %v5593_v27, %v2557_v15  ;;  %v2669_v33 = vpop.xlane.xlu0 %2668  ;;  %v2448_v35 = vsel %vm2102_vm4, %v5646_v31, 0.0 }
 0x512   :  { %v2670_v36 = vsub.f32 %v5597_v30, %v2669_v33  ;;  %2449 = vadd.xlane.f32.xlu1 %v2448_v35 }
 0x513   :  { %v2559_v3 = vmul.f32 1.442695, %v2558_v32 }
 0x514   :  { %v2671_v37 = vmul.f32 1.442695, %v2670_v36  ;;  %v2346_v36 = vsel %vm2118_vm2, %v5458_v49, 0 }
 0x515   :  { %5102 = vpow2.f32 %v2559_v3 }
 0x516   :  { %5104 = vpow2.f32 %v2671_v37 }
 0x519   :  { %v2784_v12 = vpop.xlane.xlu1 %2783 }
 0x51a   :  { %v2785_v41 = vsub.f32 %v5606_v38, %v2784_v12 }
 0x51b   :  { %v5653_v39 = vpop.eup %5100 }
 0x51c   :  { %v2786_v44 = vmul.f32 1.442695, %v2785_v41  ;;  %v2222_v27 = vsel %vm2102_vm4, %v5653_v39, 0.0 }
 0x51d   :  { %2223 = vadd.xlane.f32.xlu1 %v2222_v27 }
 0x51e   :  { %5106 = vpow2.f32 %v2786_v44 }
 0x51f   :  { %v5657_v48 = vpop.eup %5102 }
 0x520   :  { %v2561_v30 = vsel %vm2102_vm4, %v5657_v48, 0.0  ;;  %v5661_v51 = vpop.eup %5104 }
 0x521   :  { %2562 = vadd.xlane.f32.xlu0 %v2561_v30  ;;  %v2673_v54 = vsel %vm2102_vm4, %v5661_v51, 0.0  ;;  %v2895_v57 = vpop.xlane.xlu0 %2894  ;;  %v2571_v30 = vsel %vm2118_vm2, %v5482_v9, 0 }
 0x522   :  { %v2896_v34 = vsub.f32 %v5612_v56, %v2895_v57 }
 0x524   :  { %v2897_v58 = vmul.f32 1.442695, %v2896_v34 }
 0x525   :  { %2674 = vadd.xlane.f32.xlu0 %v2673_v54 }
 0x526   :  { %5108 = vpow2.f32 %v2897_v58 }
 0x528   :  { %v5665_v38 = vpop.eup %5106 }
 0x529   :  { %v2788_v55 = vsel %vm2102_vm4, %v5665_v38, 0.0  ;;  %v3009_v59 = vpop.xlane.xlu1 %3008 }
 0x52a   :  { %2789 = vadd.xlane.f32.xlu0 %v2788_v55  ;;  %v3010_v60 = vsub.f32 %v5618_v61, %v3009_v59 }
 0x52c   :  { %v3011_v13 = vmul.f32 1.442695, %v3010_v60 }
 0x52d   :  { %v2338_v24 = vpop.xlane.xlu1 %2337 }
 0x52e   :  { %2229 = vrot.lane.b32.xlu1 %v5454_v43, %s5271_s3  ;;  %5110 = vpow2.f32 %v3011_v13 }
 0x530   :  { %v5676_v53 = vpop.eup %5108 }
 0x531   :  { %v3120_v62 = vpop.xlane.xlu0 %3119  ;;  %v2899_v63 = vsel %vm2102_vm4, %v5676_v53, 0.0 }
 0x532   :  { %v3121_v52 = vsub.f32 %v5628_v0, %v3120_v62  ;;  %v2799_v62 = vsel %vm2118_vm2, %v2794_v5, 0 }
 0x534   :  { %v3122_v40 = vmul.f32 1.442695, %v3121_v52 }
 0x536   :  { %5112 = vpow2.f32 %v3122_v40 }
 0x538   :  { %v5680_v56 = vpop.eup %5110 }
 0x539   :  { %v3013_v1 = vsel %vm2102_vm4, %v5680_v56, 0.0  ;;  %v3234_v0 = vpop.xlane.xlu0 %3233 }
 0x53a   :  { %v3235_v2 = vsub.f32 %v5634_v6, %v3234_v0 }
 0x53c   :  { %v3236_v4 = vmul.f32 1.442695, %v3235_v2  ;;  %v3024_v2 = vsel %vm2118_vm2, %v3019_v11, 0 }
 0x53e   :  { %5114 = vpow2.f32 %v3236_v4 }
 0x540   :  { %2455 = vrot.lane.b32.xlu0 %v5458_v49, %s5271_s3  ;;  %v5684_v45 = vpop.eup %5112 }
 0x541   :  { %v3124_v61 = vsel %vm2102_vm4, %v5684_v45, 0.0  ;;  %v3345_v14 = vpop.xlane.xlu0 %3344 }
 0x542   :  { %v3346_v17 = vsub.f32 %v5640_v19, %v3345_v14 }
 0x544   :  { %v3347_v18 = vmul.f32 1.442695, %v3346_v17 }
 0x546   :  { %5116 = vpow2.f32 %v3347_v18 }
 0x548   :  { %v5699_v7 = vpop.eup %5114 }
 0x549   :  { %v3238_v6 = vsel %vm2102_vm4, %v5699_v7, 0.0 }
 0x550   :  { %v5705_v22 = vpop.eup %5116 }
 0x551   :  { %v3349_v23 = vsel %vm2102_vm4, %v5705_v22, 0.0 }
 0x552   :  { %2900 = vadd.xlane.f32.xlu1 %v2899_v63 }
 0x55f   :  { %3014 = vadd.xlane.f32.xlu0 %v3013_v1 }
 0x563   :  { %2680 = vrot.lane.b32.xlu1 %v5482_v9, %s5271_s3  ;;  %3125 = vadd.xlane.f32.xlu0 %v3124_v61 }
 0x579   :  { %2905 = vrot.lane.b32.xlu0 %v2794_v5, %s5271_s3 }
 0x57d   :  { %3130 = vrot.lane.b32.xlu0 %v3019_v11, %s5271_s3 }
 0x587   :  { %3239 = vadd.xlane.f32.xlu1 %v3238_v6 }
 0x598   :  { %3355 = vrot.lane.b32.xlu1 %v3244_v20, %s5271_s3 }
 0x59c   :  { %3350 = vadd.xlane.f32.xlu0 %v3349_v23 }
 0x59f   :  { %v2450_v19 = vpop.xlane.xlu1 %2449 }
 0x5aa   :  { %v2224_v42 = vpop.xlane.xlu1 %2223 }
 0x5ab   :  { %5118 = vrcp.f32 %v2224_v42 }
 0x5ac   :  { %5120 = vrcp.f32 %v2338_v24 }
 0x5ad   :  { %5122 = vrcp.f32 %v2450_v19 }
 0x5ae   :  { %v2563_v25 = vpop.xlane.xlu0 %2562  ;;  %v2230_v26 = vpop.permute.xlu1 %2229 }
 0x5af   :  { %v2235_v28 = vsel %vm2118_vm2, %v2230_v26, 0  ;;  %5124 = vrcp.f32 %v2563_v25 }
 0x5b0   :  { %4484 = vmatpush3.bf16.msra.mxu1 %v2235_v28 }
 0x5b1   :  { %4495 = vmatprep.subr.bf16.mxu1 %v5269_v21 }
 0x5b2   :  { %v2675_v29 = vpop.xlane.xlu0 %2674 }
 0x5b3   :  { %5126 = vrcp.f32 %v2675_v29 }
 0x5b5   :  { %v5119_v50 = vpop.eup %5118 }
 0x5b6   :  { %v2226_v15 = vmul.f32 %v5119_v50, %v5653_v39  ;;  %v5121_v33 = vpop.eup %5120  ;;  %v4996_v50 = vld [vmem:[#allocation9] ss:$12 sps:$4 sm:$0xff]  }
 0x5b7   :  { %v2790_v35 = vpop.xlane.xlu0 %2789  ;;  %v2340_v3 = vmul.f32 %v5121_v33, %v5622_v10  ;;  %v5123_v41 = vpop.eup %5122  ;;  %v4999_v33 = vld [vmem:[#allocation9 + $0x18] ss:$12 sps:$4 sm:$0xff]  }
 0x5b8   :  { %v2227_v32 = vpack.c.bf16 %v2226_v15, %v2226_v15  ;;  %v2452_v44 = vmul.f32 %v5123_v41, %v5646_v31  ;;  %5128 = vrcp.f32 %v2790_v35  ;;  %v4998_v15 = vld [vmem:[#allocation9 + $0x4] ss:$12 sps:$4 sm:$0xff]   ;;  %v5023_v41 = vld [vmem:[#allocation9 + $0xc8] ss:$12 sps:$4 sm:$0xff]  }
 0x5b9   :  { %v2341_v12 = vpack.c.bf16 %v2340_v3, %v2340_v3  ;;  %v5125_v10 = vpop.eup %5124  ;;  %3830 = vmatprep.subr.bf16.mxu0 %v4998_v15  ;;  %v5045_v15 = vld [vmem:[#allocation9 + $0x138] ss:$12 sps:$4 sm:$0xff]  }
 0x5ba   :  { %4486 = vmatmul.mubr.msk.bf16.vlgmr.msra.gmra.mrb[24].mxu1 %vm2102_vm4, %v2227_v32  ;;  %v2453_v27 = vpack.c.bf16 %v2452_v44, %v2452_v44  ;;  %v2565_v54 = vmul.f32 %v5125_v10, %v5657_v48  ;;  %v5001_v32 = vld [vmem:[#allocation9 + $0x1c] ss:$12 sps:$4 sm:$0xff]   ;;  %3831 = vmatpush1.bf16.msra.mxu0 %v4996_v50  ;;  %v5007_v44 = vld [vmem:[#allocation9 + $0x4c] ss:$12 sps:$4 sm:$0xff]  }
 0x5bb   :  { %4496 = vmatpush3.bf16.msra.mxu1 %v2346_v36  ;;  %4497 = vmatprep.mubr.msk.bf16.mxu1 %vm5270_vm0, %v5269_v21  ;;  %v2456_v37 = vpop.permute.xlu0 %2455  ;;  %v5004_v36 = vld [vmem:[#allocation9 + $0x34] ss:$12 sps:$4 sm:$0xff]  }
 0x5bc   :  { %4507 = vmatprep.subr.bf16.mxu1 %v5269_v21  ;;  %v2461_v39 = vsel %vm2118_vm2, %v2456_v37, 0  ;;  %v2566_v55 = vpack.c.bf16 %v2565_v54, %v2565_v54  ;;  %3832 = vmatprep.subr.bf16.mxu0 %v5001_v32  ;;  %v5002_v37 = vld [vmem:[#allocation9 + $0x30] ss:$12 sps:$4 sm:$0xff]   ;;  %v5029_v10 = vld [vmem:[#allocation9 + $0x20] ss:$12 sps:$4 sm:$0xff]  }
 0x5bd   :  { %v5127_v31 = vpop.eup %5126  ;;  %v5033_v54 = vld [vmem:[#allocation9 + $0xf8] ss:$12 sps:$4 sm:$0xff]   ;;  %v5047_v32 = vld [vmem:[#allocation9 + $0x13c] ss:$12 sps:$4 sm:$0xff]  }
 0x5be   :  { %v2677_v34 = vmul.f32 %v5127_v31, %v5661_v51  ;;  %3833 = vmatpush1.bf16.msra.mxu0 %v4999_v33  ;;  %v5010_v31 = vld [vmem:[#allocation9 + $0x64] ss:$12 sps:$4 sm:$0xff]   ;;  %v5048_v33 = vld [vmem:[#allocation9 + $0x140] ss:$12 sps:$4 sm:$0xff]  }
 0x5bf   :  { %3834 = vmatprep.subr.bf16.mxu0 %v5004_v36 }
 0x5c0   :  { %v2678_v48 = vpack.c.bf16 %v2677_v34, %v2677_v34 }
 0x5c2   :  { %4498 = vmatmul.mubr.msk.bf16.vlgmr.msra.gmra.mrb[28].mxu1 %vm2102_vm4, %v2341_v12  ;;  %v5129_v60 = vpop.eup %5128  ;;  %3835 = vmatpush1.bf16.msra.mxu0 %v5002_v37 }
 0x5c3   :  { %4508 = vmatpush3.bf16.msra.mxu1 %v2461_v39  ;;  %4509 = vmatprep.mubr.msk.bf16.mxu1 %vm5270_vm0, %v5269_v21  ;;  %v2792_v51 = vmul.f32 %v5129_v60, %v5665_v38  ;;  %v5024_v39 = vld [vmem:[#allocation9 + $0x8] ss:$12 sps:$4 sm:$0xff]   ;;  %v5038_v60 = vld [vmem:[#allocation9 + $0x110] ss:$12 sps:$4 sm:$0xff]  }
 0x5c4   :  { %4519 = vmatprep.subr.bf16.mxu1 %v5269_v21  ;;  %3836 = vmatprep.subr.bf16.mxu0 %v5007_v44 }
 0x5c5   :  { %v2793_v52 = vpack.c.bf16 %v2792_v51, %v2792_v51  ;;  %v5039_v51 = vld [vmem:[#allocation9 + $0x50] ss:$12 sps:$4 sm:$0xff]  }
 0x5ca   :  { %4510 = vmatmul.mubr.msk.bf16.vlgmr.msra.gmra.mrb[32].mxu1 %vm2102_vm4, %v2453_v27  ;;  %v5028_v27 = vld [vmem:[#allocation9 + $0xe0] ss:$12 sps:$4 sm:$0xff]  }
 0x5cb   :  { %4520 = vmatpush3.bf16.msra.mxu1 %v2571_v30  ;;  %4521 = vmatprep.mubr.msk.bf16.mxu1 %vm5270_vm0, %v5269_v21  ;;  %v5005_v30 = vld [vmem:[#allocation9 + $0x48] ss:$12 sps:$4 sm:$0xff]  }
 0x5cc   :  { %4531 = vmatprep.subr.bf16.mxu1 %v5269_v21  ;;  %3837 = vmatpush1.bf16.msra.mxu0 %v5005_v30  ;;  %v5058_v30 = vld [vmem:[#allocation9 + $0x170] ss:$12 sps:$4 sm:$0xff]  }
 0x5cd   :  { %3838 = vmatprep.subr.bf16.mxu0 %v5010_v31 }
 0x5d2   :  { %4522 = vmatmul.mubr.msk.bf16.vlgmr.msra.gmra.mrb[36].mxu1 %vm2102_vm4, %v2566_v55 }
 0x5d3   :  { %4533 = vmatprep.mubr.msk.bf16.mxu1 %vm5270_vm0, %v5269_v21 }
 0x5df   :  { %v2901_v57 = vpop.xlane.xlu1 %2900 }
 0x5e0   :  { %5130 = vrcp.f32 %v2901_v57 }
 0x5e3   :  { %v2681_v58 = vpop.permute.xlu1 %2680 }
 0x5e4   :  { %v2686_v59 = vsel %vm2118_vm2, %v2681_v58, 0  ;;  %v5034_v58 = vld [vmem:[#allocation9 + $0x38] ss:$12 sps:$4 sm:$0xff]  }
 0x5e5   :  { %4532 = vmatpush3.bf16.msra.mxu1 %v2686_v59 }
 0x5e6   :  { %4543 = vmatprep.subr.bf16.mxu1 %v5269_v21 }
 0x5e8   :  { %4534 = vmatmul.mubr.msk.bf16.vlgmr.msra.gmra.mrb[40].mxu1 %vm2102_vm4, %v2678_v48  ;;  %v5008_v48 = vld [vmem:[#allocation9 + $0x60] ss:$12 sps:$4 sm:$0xff]  }
 0x5e9   :  { %4544 = vmatpush3.bf16.msra.mxu1 %v2799_v62  ;;  %4545 = vmatprep.mubr.msk.bf16.mxu1 %vm5270_vm0, %v5269_v21  ;;  %v5013_v62 = vld [vmem:[#allocation9 + $0x7c] ss:$12 sps:$4 sm:$0xff]  }
 0x5ea   :  { %4555 = vmatprep.subr.bf16.mxu1 %v5269_v21  ;;  %v5131_v40 = vpop.eup %5130  ;;  %3839 = vmatpush1.bf16.msra.mxu0 %v5008_v48 }
 0x5eb   :  { %v2903_v43 = vmul.f32 %v5131_v40, %v5676_v53  ;;  %3840 = vmatprep.subr.bf16.mxu0 %v5013_v62 }
 0x5ec   :  { %v3015_v13 = vpop.xlane.xlu0 %3014 }
 0x5ed   :  { %5132 = vrcp.f32 %v3015_v13  ;;  %v2904_v38 = vpack.c.bf16 %v2903_v43, %v2903_v43  ;;  %v5011_v13 = vld [vmem:[#allocation9 + $0x78] ss:$12 sps:$4 sm:$0xff]  }
 0x5ee   :  { %3841 = vmatpush1.bf16.msra.mxu0 %v5011_v13 }
 0x5f0   :  { %v3126_v63 = vpop.xlane.xlu0 %3125  ;;  %4546 = vmatmul.mubr.msk.bf16.vlgmr.msra.gmra.mrb[44].mxu1 %vm2102_vm4, %v2793_v52  ;;  %v5043_v52 = vld [vmem:[#allocation9 + $0x128] ss:$12 sps:$4 sm:$0xff]  }
 0x5f1   :  { %4557 = vmatprep.mubr.msk.bf16.mxu1 %vm5270_vm0, %v5269_v21  ;;  %5134 = vrcp.f32 %v3126_v63  ;;  %v5016_v63 = vld [vmem:[#allocation9 + $0x94] ss:$12 sps:$4 sm:$0xff]  }
 0x5f2   :  { %3842 = vmatprep.subr.bf16.mxu0 %v5016_v63 }
 0x5f4   :  { %v2906_v1 = vpop.permute.xlu0 %2905 }
 0x5f5   :  { %v2911_v61 = vsel %vm2118_vm2, %v2906_v1, 0 }
 0x5f6   :  { %4556 = vmatpush3.bf16.msra.mxu1 %v2911_v61  ;;  %v5044_v61 = vld [vmem:[#allocation9 + $0x68] ss:$12 sps:$4 sm:$0xff]  }
 0x5f7   :  { %4567 = vmatprep.subr.bf16.mxu1 %v5269_v21  ;;  %v5133_v0 = vpop.eup %5132 }
 0x5f8   :  { %v3017_v53 = vmul.f32 %v5133_v0, %v5680_v56  ;;  %v3131_v4 = vpop.permute.xlu0 %3130  ;;  %v3249_v56 = vsel %vm2118_vm2, %v3244_v20, 0  ;;  %v5014_v0 = vld [vmem:[#allocation9 + $0x90] ss:$12 sps:$4 sm:$0xff]  }
 0x5f9   :  { %4558 = vmatmul.mubr.msk.bf16.vlgmr.msra.gmra.mrb[48].mxu1 %vm2102_vm4, %v2904_v38  ;;  %v3136_v17 = vsel %vm2118_vm2, %v3131_v4, 0  ;;  %3843 = vmatpush1.bf16.msra.mxu0 %v5014_v0  ;;  %v5022_v4 = vld [vmem:[#allocation9 + $0xc4] ss:$12 sps:$4 sm:$0xff]  }
 0x5fa   :  { %4568 = vmatpush3.bf16.msra.mxu1 %v3024_v2  ;;  %4569 = vmatprep.mubr.msk.bf16.mxu1 %vm5270_vm0, %v5269_v21  ;;  %v3018_v5 = vpack.c.bf16 %v3017_v53, %v3017_v53  ;;  %v5019_v2 = vld [vmem:[#allocation9 + $0xac] ss:$12 sps:$4 sm:$0xff]   ;;  %v5017_v53 = vld [vmem:[#allocation9 + $0xa8] ss:$12 sps:$4 sm:$0xff]  }
 0x5fb   :  { %4579 = vmatprep.subr.bf16.mxu1 %v5269_v21  ;;  %v5135_v14 = vpop.eup %5134  ;;  %3844 = vmatprep.subr.bf16.mxu0 %v5019_v2 }
 0x5fc   :  { %v3128_v49 = vmul.f32 %v5135_v14, %v5684_v45  ;;  %v5027_v14 = vld [vmem:[#allocation9 + $0xdc] ss:$12 sps:$4 sm:$0xff]  }
 0x5fd   :  { %3845 = vmatpush1.bf16.msra.mxu0 %v5017_v53 }
 0x5fe   :  { %v3129_v11 = vpack.c.bf16 %v3128_v49, %v3128_v49  ;;  %3846 = vmatprep.subr.bf16.mxu0 %v5022_v4  ;;  %v5032_v49 = vld [vmem:[#allocation9 + $0xf4] ss:$12 sps:$4 sm:$0xff]  }
 0x5ff   :  { %v5060_v4 = vld [vmem:[#allocation9 + $0x180] ss:$12 sps:$4 sm:$0xff]  }
 0x601   :  { %4570 = vmatmul.mubr.msk.bf16.vlgmr.msra.gmra.mrb[52].mxu1 %vm2102_vm4, %v3018_v5  ;;  %v5020_v5 = vld [vmem:[#allocation9 + $0xc0] ss:$12 sps:$4 sm:$0xff]  }
 0x602   :  { %4580 = vmatpush3.bf16.msra.mxu1 %v3136_v17  ;;  %4581 = vmatprep.mubr.msk.bf16.mxu1 %vm5270_vm0, %v5269_v21  ;;  %v5025_v17 = vld [vmem:[#allocation9 + $0xd8] ss:$12 sps:$4 sm:$0xff]  }
 0x603   :  { %4591 = vmatprep.subr.bf16.mxu1 %v5269_v21  ;;  %3847 = vmatpush1.bf16.msra.mxu0 %v5020_v5 }
 0x604   :  { %3848 = vmatprep.subr.bf16.mxu0 %v5027_v14 }
 0x607   :  { %3849 = vmatpush1.bf16.msra.mxu0 %v5025_v17  ;;  %v5063_v17 = vld [vmem:[#allocation9 + $0x188] ss:$12 sps:$4 sm:$0xff]  }
 0x608   :  { %3850 = vmatprep.subr.bf16.mxu0 %v5032_v49 }
 0x609   :  { %4582 = vmatmul.mubr.msk.bf16.vlgmr.msra.gmra.mrb[56].mxu1 %vm2102_vm4, %v3129_v11  ;;  %v5030_v11 = vld [vmem:[#allocation9 + $0xf0] ss:$12 sps:$4 sm:$0xff]  }
 0x60a   :  { %4592 = vmatpush3.bf16.msra.mxu1 %v3249_v56  ;;  %4593 = vmatprep.mubr.msk.bf16.mxu1 %vm5270_vm0, %v5269_v21  ;;  %v5037_v56 = vld [vmem:[#allocation9 + $0x10c] ss:$12 sps:$4 sm:$0xff]  }
 0x60b   :  { %4603 = vmatprep.subr.bf16.mxu1 %v5269_v21  ;;  %3851 = vmatpush1.bf16.msra.mxu0 %v5030_v11  ;;  %v5066_v11 = vld [vmem:[#allocation9 + $0x19c] ss:$12 sps:$4 sm:$0xff]  }
 0x60c   :  { %3852 = vmatprep.subr.bf16.mxu0 %v5037_v56  ;;  %v5064_v56 = vld [vmem:[#allocation9 + $0x198] ss:$12 sps:$4 sm:$0xff]  }
 0x614   :  { %v3240_v6 = vpop.xlane.xlu1 %3239 }
 0x615   :  { %5136 = vrcp.f32 %v3240_v6 }
 0x618   :  { %v3356_v23 = vpop.permute.xlu1 %3355 }
 0x619   :  { %v3361_v19 = vsel %vm2118_vm2, %v3356_v23, 0 }
 0x61f   :  { %v5137_v18 = vpop.eup %5136 }
 0x620   :  { %v3242_v45 = vmul.f32 %v5137_v18, %v5699_v7 }
 0x622   :  { %v3243_v24 = vpack.c.bf16 %v3242_v45, %v3242_v45  ;;  %v5035_v45 = vld [vmem:[#allocation9 + $0x108] ss:$12 sps:$4 sm:$0xff]  }
 0x623   :  { %3853 = vmatpush1.bf16.msra.mxu0 %v5035_v45  ;;  %v5068_v45 = vld [vmem:[#allocation9 + $0x1b0] ss:$12 sps:$4 sm:$0xff]  }
 0x624   :  { %4594 = vmatmul.mubr.msk.bf16.vlgmr.msra.gmra.mrb[60].mxu1 %vm2102_vm4, %v3243_v24  ;;  %v5042_v24 = vld [vmem:[#allocation9 + $0x124] ss:$12 sps:$4 sm:$0xff]  }
 0x625   :  { %4604 = vmatpush3.bf16.msra.mxu1 %v3361_v19  ;;  %4605 = vmatprep.mubr.msk.bf16.mxu1 %vm5270_vm0, %v5269_v21 }
 0x626   :  { %4414 = vmatprep.subr.bf16.mxu1 %v5023_v41  ;;  %3854 = vmatprep.subr.bf16.mxu0 %v5042_v24  ;;  %v5054_v41 = vld [vmem:[#allocation9 + $0x98] ss:$12 sps:$4 sm:$0xff]  }
 0x627   :  { %v5074_v24 = vld [vmem:[#allocation9 + $0x1cc] ss:$12 sps:$4 sm:$0xff]  }
 0x629   :  { %v3351_v9 = vpop.xlane.xlu0 %3350 }
 0x62a   :  { %5138 = vrcp.f32 %v3351_v9  ;;  %v5040_v9 = vld [vmem:[#allocation9 + $0x120] ss:$12 sps:$4 sm:$0xff]  }
 0x62b   :  { %3855 = vmatpush1.bf16.msra.mxu0 %v5040_v9  ;;  %v5075_v9 = vld [vmem:[#allocation9 + $0x1d0] ss:$12 sps:$4 sm:$0xff]  }
 0x62c   :  { %3856 = vmatprep.subr.bf16.mxu0 %v5047_v32  ;;  %v5088_v32 = vld [vmem:[#allocation9 + $0x228] ss:$12 sps:$4 sm:$0xff]  }
 0x62f   :  { %3857 = vmatpush1.bf16.msra.mxu0 %v5045_v15  ;;  %v5090_v15 = vld [vmem:[#allocation9 + $0x22c] ss:$12 sps:$4 sm:$0xff]  }
 0x634   :  { %v5139_v20 = vpop.eup %5138 }
 0x635   :  { %v3353_v42 = vmul.f32 %v5139_v20, %v5705_v22 }
 0x637   :  { %v3354_v25 = vpack.c.bf16 %v3353_v42, %v3353_v42 }
 0x639   :  { %4606 = vmatmul.mubr.msk.bf16.vlgmr.msra.gmra.mrb[64].mxu1 %vm2102_vm4, %v3354_v25 }
 0x63a   :  { %4415 = vmatpush3.bf16.msra.mxu1 %v5024_v39 }
 0x63b   :  { %4416 = vmatprep.subr.bf16.mxu1 %v5028_v27  ;;  %v5055_v27 = vld [vmem:[#allocation9 + $0x168] ss:$12 sps:$4 sm:$0xff]  }
 0x63e   :  { %4417 = vmatpush3.bf16.msra.mxu1 %v5029_v10  ;;  %v5057_v10 = vld [vmem:[#allocation9 + $0x16c] ss:$12 sps:$4 sm:$0xff]  }
 0x63f   :  { %4418 = vmatprep.subr.bf16.mxu1 %v5033_v54  ;;  %v5059_v54 = vld [vmem:[#allocation9 + $0xb0] ss:$12 sps:$4 sm:$0xff]  }
 0x642   :  { %4419 = vmatpush3.bf16.msra.mxu1 %v5034_v58 }
 0x643   :  { %4420 = vmatprep.subr.bf16.mxu1 %v5038_v60 }
 0x646   :  { %4421 = vmatpush3.bf16.msra.mxu1 %v5039_v51 }
 0x647   :  { %4422 = vmatprep.subr.bf16.mxu1 %v5043_v52 }
 0x64a   :  { %4423 = vmatpush3.bf16.msra.mxu1 %v5044_v61 }
 0x64b   :  { %4424 = vmatprep.subr.bf16.mxu1 %v5048_v33  ;;  %v5091_v33 = vld [vmem:[#allocation9 + $0x230] ss:$12 sps:$4 sm:$0xff]  }
 0x68d   :  { %v2271_v26 = vpop.f32.mrb[24].mxu1 }
 0x68e   :  { %2278 = vrot.lane.b32.xlu1 %v2271_v26, %s5271_s3  ;;  %v4487_v7 = vpop.f32.mrb[25].mxu1 }
 0x68f   :  { %v2274_v28 = vpop.f32.mrb[26].mxu1 }
 0x690   :  { %v4488_v29 = vpop.f32.mrb[27].mxu1 }
 0x695   :  { %v2382_v35 = vpop.f32.mrb[28].mxu1 }
 0x696   :  { %2388 = vst.msk [vmem:[#allocation2 + $0x8] sm:$0xff] %vm2054_vm1, %v2382_v35  ;;  %v4499_v22 = vpop.f32.mrb[29].mxu1  ;;  %v5049_v35 = vld [vmem:[#allocation9 + $0x80] ss:$12 sps:$4 sm:$0xff]  }
 0x697   :  { %v2385_v3 = vpop.f32.mrb[30].mxu1  ;;  %4425 = vmatpush3.bf16.msra.mxu1 %v5049_v35  ;;  %v5050_v22 = vld [vmem:[#allocation9 + $0x150] ss:$12 sps:$4 sm:$0xff]  }
 0x698   :  { %v4500_v12 = vpop.f32.mrb[31].mxu1  ;;  %v5052_v3 = vld [vmem:[#allocation9 + $0x154] ss:$12 sps:$4 sm:$0xff]  }
 0x699   :  { %v5053_v12 = vld [vmem:[#allocation9 + $0x158] ss:$12 sps:$4 sm:$0xff]   ;;  %3858 = vmatprep.subr.bf16.mxu0 %v5052_v3 }
 0x69a   :  { %4426 = vmatprep.subr.bf16.mxu1 %v5053_v12  ;;  %3859 = vmatpush1.bf16.msra.mxu0 %v5050_v22 }
 0x69b   :  { %4427 = vmatpush3.bf16.msra.mxu1 %v5054_v41  ;;  %3860 = vmatprep.subr.bf16.mxu0 %v5057_v10 }
 0x69c   :  { %4428 = vmatprep.subr.bf16.mxu1 %v5058_v30 }
 0x69d   :  { %v2497_v55 = vpop.f32.mrb[32].mxu1 }
 0x69e   :  { %2504 = vrot.lane.b32.xlu0 %v2497_v55, %s5271_s3  ;;  %v4511_v57 = vpop.f32.mrb[33].mxu1  ;;  %3861 = vmatpush1.bf16.msra.mxu0 %v5055_v27 }
 0x69f   :  { %v2500_v34 = vpop.f32.mrb[34].mxu1  ;;  %4429 = vmatpush3.bf16.msra.mxu1 %v5059_v54 }
 0x6a0   :  { %v4512_v59 = vpop.f32.mrb[35].mxu1  ;;  %4609 = vmatprep.subr.bf16.mxu1 %v5269_v21  ;;  %v5062_v34 = vld [vmem:[#allocation9 + $0x184] ss:$12 sps:$4 sm:$0xff]  }
 0x6a1   :  { %3873 = vmatprep.subr.bf16.mxu0 %v5062_v34 }
 0x6a5   :  { %v2607_v40 = vpop.f32.mrb[36].mxu1 }
 0x6a6   :  { %2613 = vst.msk [vmem:[#allocation2 + $0x10] sm:$0xff] %vm2054_vm1, %v2607_v40  ;;  %v4523_v43 = vpop.f32.mrb[37].mxu1 }
 0x6a7   :  { %v2610_v1 = vpop.f32.mrb[38].mxu1 }
 0x6a8   :  { %v4524_v38 = vpop.f32.mrb[39].mxu1 }
 0x6bb   :  { %v2722_v6 = vpop.f32.mrb[40].mxu1 }
 0x6bc   :  { %v4535_v18 = vpop.f32.mrb[41].mxu1 }
 0x6bd   :  { %v2725_v23 = vpop.f32.mrb[42].mxu1  ;;  %v5070_v18 = vld [vmem:[#allocation9 + $0x1b4] ss:$12 sps:$4 sm:$0xff]  }
 0x6be   :  { %v4536_v19 = vpop.f32.mrb[43].mxu1  ;;  %v5071_v23 = vld [vmem:[#allocation9 + $0x1b8] ss:$12 sps:$4 sm:$0xff]  }
 0x6bf   :  { %v5072_v19 = vld [vmem:[#allocation9 + $0x1c8] ss:$12 sps:$4 sm:$0xff]  }
 0x6c3   :  { %v2835_v20 = vpop.f32.mrb[44].mxu1 }
 0x6c4   :  { %2841 = vst.msk [vmem:[#allocation2 + $0x18] sm:$0xff] %vm2054_vm1, %v2835_v20  ;;  %v4547_v42 = vpop.f32.mrb[45].mxu1  ;;  %v5078_v20 = vld [vmem:[#allocation9 + $0x1e4] ss:$12 sps:$4 sm:$0xff]  }
 0x6c5   :  { %v2838_v25 = vpop.f32.mrb[46].mxu1  ;;  %v5079_v42 = vld [vmem:[#allocation9 + $0x1e8] ss:$12 sps:$4 sm:$0xff]  }
 0x6c6   :  { %v4548_v26 = vpop.f32.mrb[47].mxu1  ;;  %v5082_v25 = vld [vmem:[#allocation9 + $0x1fc] ss:$12 sps:$4 sm:$0xff]  }
 0x6c7   :  { %v5080_v26 = vld [vmem:[#allocation9 + $0x1f8] ss:$12 sps:$4 sm:$0xff]  }
 0x6cc   :  { %v2947_v7 = vpop.f32.mrb[48].mxu1 }
 0x6cd   :  { %v4559_v28 = vpop.f32.mrb[49].mxu1 }
 0x6ce   :  { %v2950_v29 = vpop.f32.mrb[50].mxu1  ;;  %v5086_v28 = vld [vmem:[#allocation9 + $0x214] ss:$12 sps:$4 sm:$0xff]  }
 0x6cf   :  { %v4560_v50 = vpop.f32.mrb[51].mxu1  ;;  %v5084_v29 = vld [vmem:[#allocation9 + $0x210] ss:$12 sps:$4 sm:$0xff]  }
 0x6d0   :  { %v5087_v50 = vld [vmem:[#allocation9 + $0x218] ss:$12 sps:$4 sm:$0xff]  }
 0x6d4   :  { %v3060_v36 = vpop.f32.mrb[52].mxu1 }
 0x6d5   :  { %3066 = vst.msk [vmem:[#allocation2 + $0x20] sm:$0xff] %vm2054_vm1, %v3060_v36  ;;  %v4571_v37 = vpop.f32.mrb[53].mxu1 }
 0x6d6   :  { %v3063_v39 = vpop.f32.mrb[54].mxu1 }
 0x6d7   :  { %v4572_v44 = vpop.f32.mrb[55].mxu1 }
 0x6dc   :  { %v3172_v55 = vpop.f32.mrb[56].mxu1 }
 0x6dd   :  { %3179 = vrot.lane.b32.xlu1 %v3172_v55, %s5271_s3  ;;  %v4583_v31 = vpop.f32.mrb[57].mxu1 }
 0x6de   :  { %v3175_v57 = vpop.f32.mrb[58].mxu1 }
 0x6df   :  { %v4584_v58 = vpop.f32.mrb[59].mxu1 }
 0x6e1   :  { %2954 = vrot.lane.b32.xlu1 %v2947_v7, %s5271_s3  ;;  %v5083_v7 = vld [vmem:[#allocation9 + $0x200] ss:$12 sps:$4 sm:$0xff]  }
 0x6e5   :  { %2729 = vrot.lane.b32.xlu1 %v2722_v6, %s5271_s3  ;;  %v5067_v6 = vld [vmem:[#allocation9 + $0x1a0] ss:$12 sps:$4 sm:$0xff]  }
 0x6f7   :  { %v3285_v59 = vpop.f32.mrb[60].mxu1 }
 0x6f8   :  { %3291 = vst.msk [vmem:[#allocation2 + $0x28] sm:$0xff] %vm2054_vm1, %v3285_v59  ;;  %v4595_v48 = vpop.f32.mrb[61].mxu1 }
 0x6f9   :  { %v3288_v60 = vpop.f32.mrb[62].mxu1 }
 0x6fa   :  { %v4596_v62 = vpop.f32.mrb[63].mxu1 }
 0x700   :  { %v2279_v51 = vpop.permute.xlu1 %2278 }
 0x701   :  { %2282 = vst.msk [vmem:[#allocation2] sm:$0xff] %vm2281_vm5, %v2279_v51 }
 0x708   :  { %v3408_v5 = vld [vmem:[#allocation2] sm:$0xff] }
 0x70c   :  { %v3397_v13 = vpop.f32.mrb[64].mxu1 }
 0x70d   :  { %3404 = vrot.lane.b32.xlu1 %v3397_v13, %s5271_s3  ;;  %v4607_v52 = vpop.f32.mrb[65].mxu1 }
 0x70e   :  { %v3400_v40 = vpop.f32.mrb[66].mxu1 }
 0x70f   :  { %v4608_v63 = vpop.f32.mrb[67].mxu1 }
 0x710   :  { %v2505_v43 = vpop.permute.xlu0 %2504 }
 0x711   :  { %2507 = vst.msk [vmem:[#allocation2 + $0x8] sm:$0xff] %vm2281_vm5, %v2505_v43 }
 0x718   :  { %v3409_v0 = vld [vmem:[#allocation2 + $0x8] sm:$0xff] }
 0x74f   :  { %v3180_v1 = vpop.permute.xlu1 %3179 }
 0x750   :  { %3182 = vst.msk [vmem:[#allocation2 + $0x20] sm:$0xff] %vm2281_vm5, %v3180_v1 }
 0x753   :  { %v2955_v61 = vpop.permute.xlu1 %2954 }
 0x754   :  { %2957 = vst.msk [vmem:[#allocation2 + $0x18] sm:$0xff] %vm2281_vm5, %v2955_v61 }
 0x757   :  { %v2730_v38 = vpop.permute.xlu1 %2729  ;;  %v3412_v2 = vld [vmem:[#allocation2 + $0x20] sm:$0xff] }
 0x758   :  { %2732 = vst.msk [vmem:[#allocation2 + $0x10] sm:$0xff] %vm2281_vm5, %v2730_v38  ;;  %v3415_v53 = vpack.c.bf16 %v3412_v2, %v3409_v0 }
 0x75a   :  { %3862 = vmatprep.mubr.bf16.mxu0 %v3415_v53  ;;  %3948 = vmatprep.mubr.bf16.mxu1 %v3415_v53 }
 0x75b   :  { %v3411_v14 = vld [vmem:[#allocation2 + $0x18] sm:$0xff] }
 0x75c   :  { %v3414_v49 = vpack.c.bf16 %v3411_v14, %v3408_v5 }
 0x75e   :  { %3863 = vmatmul.mubr.bf16.vlgmr.msra.gmra.mrb[52].mxu0 %v3414_v49  ;;  %3949 = vmatmul.mubr.bf16.vlgmr.msra.gmra.mrb[68].mxu1 %v3414_v49 }
 0x75f   :  { %3874 = vmatpush1.bf16.msra.mxu0 %v5060_v4  ;;  %4610 = vmatpush3.bf16.msra.mxu1 %v5063_v17  ;;  %v3410_v36 = vld [vmem:[#allocation2 + $0x10] sm:$0xff] }
 0x760   :  { %3875 = vmatprep.subr.bf16.mxu0 %v5066_v11  ;;  %4611 = vmatprep.subr.bf16.mxu1 %v5269_v21 }
 0x761   :  { %3905 = vmatprep.mubr.bf16.mxu0 %v5268_v16  ;;  %4625 = vmatprep.mubr.msk.bf16.mxu1 %vm5270_vm0, %v5269_v21  ;;  %v5076_v16 = vld [vmem:[#allocation9 + $0x1e0] ss:$12 sps:$4 sm:$0xff]  }
 0x763   :  { %3876 = vmatpush1.bf16.msra.mxu0 %v5064_v56  ;;  %4612 = vmatpush3.bf16.msra.mxu1 %v5067_v6 }
 0x764   :  { %3877 = vmatprep.subr.bf16.mxu0 %v5070_v18  ;;  %4613 = vmatprep.subr.bf16.mxu1 %v5269_v21 }
 0x767   :  { %3878 = vmatpush1.bf16.msra.mxu0 %v5068_v45  ;;  %4614 = vmatpush3.bf16.msra.mxu1 %v5071_v23 }
 0x768   :  { %3879 = vmatprep.subr.bf16.mxu0 %v5074_v24  ;;  %4615 = vmatprep.subr.bf16.mxu1 %v5269_v21 }
 0x76b   :  { %3880 = vmatpush1.bf16.msra.mxu0 %v5072_v19  ;;  %4616 = vmatpush3.bf16.msra.mxu1 %v5075_v9 }
 0x76c   :  { %3881 = vmatprep.subr.bf16.mxu0 %v5078_v20  ;;  %4617 = vmatprep.subr.bf16.mxu1 %v5269_v21 }
 0x76f   :  { %3882 = vmatpush1.bf16.msra.mxu0 %v5076_v16  ;;  %4618 = vmatpush3.bf16.msra.mxu1 %v5079_v42 }
 0x770   :  { %3883 = vmatprep.subr.bf16.mxu0 %v5082_v25  ;;  %4619 = vmatprep.subr.bf16.mxu1 %v5269_v21 }
 0x773   :  { %3884 = vmatpush1.bf16.msra.mxu0 %v5080_v26  ;;  %4620 = vmatpush3.bf16.msra.mxu1 %v5083_v7 }
 0x774   :  { %3885 = vmatprep.subr.bf16.mxu0 %v5086_v28  ;;  %4621 = vmatprep.subr.bf16.mxu1 %v5269_v21 }
 0x777   :  { %3886 = vmatpush1.bf16.msra.mxu0 %v5084_v29  ;;  %4622 = vmatpush3.bf16.msra.mxu1 %v5087_v50 }
 0x778   :  { %3887 = vmatprep.subr.bf16.mxu0 %v5090_v15  ;;  %4623 = vmatprep.subr.bf16.mxu1 %v5269_v21  ;;  %v422_v21 = vld [vmem:[%s5839_s4] sm:$0x7]  ;;  %s5272_s4 = smov [#allocation11]  }
 0x779   :  { %v3417_v10 = vunpack.c.l.bf16 %v422_v21  ;;  %s4009_s23 = sshll.u32 %s5272_s4, 4  ;;  %s4010_s23 = int_to_ptr.vmem [resolvable:$true] %s4009_s23 }
 0x77a   :  { %s5228_s24 = scalar_lea.vmem %s4010_s23, 768  ;;  %p5233_p5 = scmp.lt.s32.totalorder %s4010_s23, %s4010_s23 }
 0x77b   :  { %3888 = vmatpush1.bf16.msra.mxu0 %v5088_v32  ;;  %4624 = vmatpush3.bf16.msra.mxu1 %v5091_v33  ;;  %v3430_v30 = vrot.slane %v3417_v10, %v5406_v46  ;;  %v3422_v54 = vrot.slane %v3417_v10, %v5409_v47  ;;  %v3426_v55 = vrot.slane %v3417_v10, %v5412_v8  ;;  %p5229_p4 = scmp.ne.s32.totalorder %s4010_s23, %s5228_s24  ;;  %p5234_p6 = scmp.lt.s32.totalorder %s5228_s24, %s5228_s24 }
 0x77d   :  { %v3445_v31 = vrot.slane %v3430_v30, %v5409_v47  ;;  %v3437_v57 = vrot.slane %v3422_v54, %v5409_v47  ;;  %v3441_v34 = vrot.slane %v3426_v55, %v5409_v47  ;;  %p5235_p7 = por %p5234_p6, %p5233_p5 }
 0x77f   :  { %v3405_v35 = vpop.permute.xlu1 %3404  ;;  %p5236_p8 = pnand %p5235_p7, %p5229_p4 }
 0x780   :  { %3407 = vst.msk [vmem:[#allocation2 + $0x28] sm:$0xff] %vm2281_vm5, %v3405_v35 }
 0x787   :  { %v3413_v22 = vld [vmem:[#allocation2 + $0x28] sm:$0xff] }
 0x788   :  { %v3416_v3 = vpack.c.bf16 %v3413_v22, %v3410_v36 }
 0x78a   :  { %3906 = vmatmul.mubr.bf16.vlgmr.msra.gmra.mrb[52].mxu0 %v3416_v3  ;;  %4626 = vmatmul.mubr.bf16.vlgmr.msra.gmra.mrb[72].mxu1 %v3416_v3 }
 0x831   :  { %v4430_v37 = vpop.f32.mrb[68].mxu1 }
 0x832   :  { %v4431_v12 = vpop.f32.mrb[69].mxu1 }
 0x833   :  { %v4432_v41 = vadd.f32 %v4431_v12, %v4430_v37  ;;  %v4433_v39 = vpop.f32.mrb[70].mxu1 }
 0x834   :  { %v4434_v44 = vpop.f32.mrb[71].mxu1 }
 0x835   :  { %v4435_v27 = vadd.f32 %v4434_v44, %v4433_v39  ;;  %v3951_v58 = vadd.f32 %v4432_v41, %v3445_v31 }
 0x837   :  { %v3954_v52 = vadd.f32 %v4435_v27, %v3445_v31 }
 0x85d   :  { %v3907_v59 = vpop.f32.mrb[52].mxu0  ;;  %v3991_v48 = vpop.f32.mrb[72].mxu1 }
 0x85e   :  { %v4645_v60 = vadd.f32 %v3907_v59, %v3437_v57  ;;  %v3992_v62 = vadd.f32 %v3991_v48, %v3951_v58  ;;  %v3909_v51 = vpop.f32.mrb[53].mxu0  ;;  %v4627_v13 = vpop.f32.mrb[73].mxu1 }
 0x85f   :  { %v4646_v46 = vadd.f32 %v3909_v51, %v3441_v34  ;;  %v3911_v40 = vpop.f32.mrb[54].mxu0  ;;  %v3994_v63 = vpop.f32.mrb[74].mxu1 }
 0x860   :  { %3998 = vst [vmem:[#allocation11] sm:$0xff] %v4645_v60  ;;  %4000 = vst [vmem:[#allocation11 + $0x10] sm:$0xff] %v3992_v62  ;;  %v4647_v8 = vadd.f32 %v3911_v40, %v3437_v57  ;;  %v3995_v43 = vadd.f32 %v3994_v63, %v3954_v52  ;;  %v3913_v1 = vpop.f32.mrb[55].mxu0  ;;  %v4628_v61 = vpop.f32.mrb[75].mxu1 }
 0x861   :  { %3999 = vst [vmem:[#allocation11 + $0x8] sm:$0xff] %v4646_v46  ;;  %v4648_v47 = vadd.f32 %v3913_v1, %v3441_v34 }
 0x862   :  { %4001 = vst [vmem:[#allocation11 + $0x18] sm:$0xff] %v4647_v8  ;;  %4003 = vst [vmem:[#allocation11 + $0x28] sm:$0xff] %v3995_v43 }
 0x863   :  { %4002 = vst [vmem:[#allocation11 + $0x20] sm:$0xff] %v4648_v47 }
 0x864   :  { %5239 = shalt.err (!%p5236_p8)
}
 0x865   :  { %s5240_s27 = scalar_lea.hbm %s5840_s5, 768 }
 0x866   :  { %p5241_p9 = scmp.ne.s32.totalorder %s5840_s5, %s5240_s27  ;;  %p5244_p10 = scmp.lt.u32.totalorder %s5240_s27, %s5840_s5 }
 0x868   :  { %p5246_p11 = pnand %p5244_p10, %p5241_p9 }
 0x86a   :  { %5249 = shalt.err (!%p5246_p11)
}
 0x86b   :  { %4015 = dma.vmem_to_hbm [thread:$0]  %s4010_s23, 768, %s5840_s5, [#allocation5], %s5262_s1, %s5262_s1, %s5263_s17  }
 0x86c   :  { %5256 = dma.done.wait [#allocation5], 768  }
 0x86d   :  { %5257 = vsyncadd [#allocation5], 4294966528 }
 0x86e   :  { %4019 = vsyncpa [#allocation4], 1 }
 0x86f   :  { %4020 = vsyncpa [#allocation7], 1 }
 0x870   :  { %4021 = vsyncpa [#allocation10], 1 }
 0x871   :  { %4022 = vsyncpa [#allocation5], 1 }

</bundles_post_ra>
